<compile_context>
chip_gen: v7x
topology: tpu7x:2x2x1
jax: 0.10.0
libtpu: 0.0.40
codegen_flags: <defaults>
</compile_context>

<pallas_src>
import jax
import jax.numpy as jnp
from jax.experimental import pallas as pl
from jax.experimental.pallas import tpu as pltpu


# ----------------------------- kernels ------------------------------------


def _disc_rowwise_kernel(x_ref, s_ref, w_ref, o_ref, acc_ref):
    """Per-row summary. Grid = (row tiles, weight-column tiles).

    h_j = s @ W[:, j*TJ:(j+1)*TJ]           (MXU, native dtype, f32 acc)
    acc += sum(x[:, j*TJ:(j+1)*TJ] * h_j, axis=1)
    """
    j = pl.program_id(1)

    @pl.when(j == 0)
    def _():
        acc_ref[...] = jnp.zeros_like(acc_ref)

    # Native-dtype MXU matmul with f32 accumulation (no operand upcast).
    h = jnp.dot(s_ref[...], w_ref[...], preferred_element_type=jnp.float32)
    prod = x_ref[...] * h                       # promotes to f32, VPU
    acc_ref[...] += jnp.sum(prod, axis=1)[None, :]   # lane-dense (1, TN)

    @pl.when(j == pl.num_programs(1) - 1)
    def _():
        o_ref[...] = acc_ref[...].astype(o_ref.dtype)


def _disc_broadcast_kernel(x_ref, h_ref, o_ref):
    """Broadcast (1-D) summary: h = summary @ W precomputed in the wrapper."""
    prod = x_ref[...] * h_ref[...]              # (TN, H) * (1, H) -> f32
    o_ref[...] = jnp.sum(prod, axis=1)[None, :].astype(o_ref.dtype)


# ----------------------------- tiling policy -------------------------------


def _round_up(x, m):
    return ((x + m - 1) // m) * m


def _pick_tile_n(n, h, itemsize, target_bytes=4 << 20):
    """Row tile: ~4 MiB of x per tile, multiple of 256, clamped to [256, 2048]
    and to the (rounded-up) problem size."""
    tn = max(256, min(2048, target_bytes // max(1, h * itemsize)))
    tn = max(256, (tn // 256) * 256)
    tn = min(tn, max(256, _round_up(n, 256)))
    return int(tn)


def _pick_tile_j(h, w_itemsize, max_bytes=8 << 20):
    """Weight column tile: keep the (H, TJ) weight block <= ~8 MiB of VMEM."""
    if h * h * w_itemsize <= max_bytes:
        return h
    for cand in (2048, 1024, 512, 256, 128):
        if h % cand == 0 and h * cand * w_itemsize <= max_bytes:
            return cand
    # TODO(synk): H not divisible by a 128-multiple; fall back to resident W.
    return h


def _vmem_limit(need_bytes):
    # Raise above the v5e 16 MiB scoped default; stay within v7x's 64 MiB.
    return int(max(32 << 20, min(need_bytes + (8 << 20), 64 << 20)))


# ----------------------------- wrapper -------------------------------------


def discriminator_forward(x, summary, weight, *, out_dtype=None):
    """x: (N, H); summary: (N, H) or (H,) broadcast; weight: (H, H) -> (N,)."""
    N, H = x.shape
    assert weight.shape == (H, H), "weight must be (hidden_dim, hidden_dim)"
    out_dtype = x.dtype if out_dtype is None else out_dtype

    x_i = jnp.dtype(x.dtype).itemsize
    w_i = jnp.dtype(weight.dtype).itemsize
    o_i = jnp.dtype(out_dtype).itemsize

    tile_n = _pick_tile_n(N, H, x_i)
    n_i = int(pl.cdiv(N, tile_n))

    if summary.ndim == 1:
        # Hoist the (1,H)@(H,H) matmul out of the per-tile body: a 1-row LHS
        # is MXU-latency dominated; do it once as a tiny XLA matmul instead.
        h_vec = jnp.dot(summary, weight, preferred_element_type=jnp.float32)
        h_vec = h_vec.reshape(1, H)

        need = 2 * tile_n * H * x_i + 2 * H * 4 + 2 * tile_n * o_i
        cost = pl.CostEstimate(
            flops=2 * N * H,
            transcendentals=0,
            bytes_accessed=N * H * x_i + H * 4 + N * o_i,
        )

        out = pl.pallas_call(
            _disc_broadcast_kernel,
            out_shape=jax.ShapeDtypeStruct((1, N), out_dtype),
            grid=(n_i,),
            in_specs=[
                pl.BlockSpec((tile_n, H), lambda i: (i, 0)),   # x tile
                pl.BlockSpec((1, H), lambda i: (0, 0)),        # resident h
            ],
            out_specs=pl.BlockSpec((1, tile_n), lambda i: (0, i)),
            compiler_params=pltpu.CompilerParams(
                dimension_semantics=("parallel",),
                vmem_limit_bytes=_vmem_limit(need),
            ),
            cost_estimate=cost,
        )(x, h_vec)
        return out[0]

    # ---- per-row summary path ----
    assert summary.shape == (N, H), "summary must be (N, H) or (H,)"
    s_i = jnp.dtype(summary.dtype).itemsize

    tile_j = _pick_tile_j(H, w_i)
    n_j = int(pl.cdiv(H, tile_j))

    w_spec_kwargs = {}
    if n_j == 1:
        # Constant-index resident weight: one VMEM buffer instead of two.
        w_spec_kwargs["pipeline_mode"] = pl.Buffered(1)
    w_spec = pl.BlockSpec((H, tile_j), lambda i, j: (0, j), **w_spec_kwargs)

    need = (
        2 * tile_n * tile_j * x_i          # x tiles (double-buffered)
        + 2 * tile_n * H * s_i             # summary tiles (double-buffered)
        + (1 if n_j == 1 else 2) * H * tile_j * w_i
        + 2 * tile_n * o_i                 # output blocks
        + tile_n * 4                       # f32 accumulator scratch
    )
    cost = pl.CostEstimate(
        flops=2 * N * H * H + 2 * N * H,
        transcendentals=0,
        bytes_accessed=N * H * x_i + N * H * s_i + H * H * w_i + N * o_i,
    )

    out = pl.pallas_call(
        _disc_rowwise_kernel,
        out_shape=jax.ShapeDtypeStruct((1, N), out_dtype),
        grid=(n_i, n_j),
        in_specs=[
            pl.BlockSpec((tile_n, tile_j), lambda i, j: (i, j)),   # x
            pl.BlockSpec((tile_n, H), lambda i, j: (i, 0)),        # summary
            w_spec,                                                # weight
        ],
        out_specs=pl.BlockSpec((1, tile_n), lambda i, j: (0, i)),
        scratch_shapes=[pltpu.VMEM((1, tile_n), jnp.float32)],
        compiler_params=pltpu.CompilerParams(
            dimension_semantics=("parallel", "arbitrary"),
            vmem_limit_bytes=_vmem_limit(need),
        ),
        cost_estimate=cost,
    )(x, summary, weight)
    return out[0]


def init_discriminator_params(key, hidden_dim, dtype=jnp.float32):
    # Mirrors `uniform(size, weight)`: U(-1/sqrt(H), 1/sqrt(H))
    bound = 1.0 / (hidden_dim ** 0.5)
    return jax.random.uniform(
        key, (hidden_dim, hidden_dim), dtype=dtype, minval=-bound, maxval=bound
    )


# ----------------------------- demo / tests --------------------------------


if __name__ == "__main__":
    key = jax.random.PRNGKey(0)
    k_w, k_x, k_s, k_x2, k_s2 = jax.random.split(key, 5)

    # Small demo shapes consistent with the module.
    N, hidden = 8, 32
    weight = init_discriminator_params(k_w, hidden)
    x = jax.random.normal(k_x, (N, hidden), dtype=jnp.float32)
    summary = jax.random.normal(k_s, (N, hidden), dtype=jnp.float32)

    out = jax.block_until_ready(discriminator_forward(x, summary, weight))
    ref = jnp.sum(x * (summary @ weight), axis=1)
    assert out.shape == (N,)
    assert jnp.allclose(out, ref, atol=1e-4, rtol=1e-4), "mismatch (2-D summary)"

    # 1-D (broadcast / DGI-style) summary path — matmul hoisted to the wrapper.
    s_vec = jax.random.normal(k_s2, (hidden,), dtype=jnp.float32)
    out_1d = jax.block_until_ready(discriminator_forward(x, s_vec, weight))
    ref_1d = jnp.sum(x * (s_vec @ weight)[None, :], axis=1)
    assert jnp.allclose(out_1d, ref_1d, atol=1e-4, rtol=1e-4), "mismatch (1-D summary)"

    # Ragged path: no wrapper pad; Pallas pads tail reads and masks tail writes.
    N2, H2 = 300, 128
    w2 = init_discriminator_params(k_w, H2)
    x2 = jax.random.normal(k_x2, (N2, H2), dtype=jnp.float32)
    s2 = jax.random.normal(k_s2, (N2, H2), dtype=jnp.float32)
    out2 = jax.block_until_ready(discriminator_forward(x2, s2, w2))
    ref2 = jnp.sum(x2 * (s2 @ w2), axis=1)
    assert out2.shape == (N2,)
    assert jnp.allclose(out2, ref2, atol=1e-3, rtol=1e-3), "mismatch (ragged)"

    # bf16 fast-MXU path: bf16 operands, f32 accumulation (looser tolerance).
    xb = x2.astype(jnp.bfloat16)
    sb = s2.astype(jnp.bfloat16)
    wb = w2.astype(jnp.bfloat16)
    outb = jax.block_until_ready(
        discriminator_forward(xb, sb, wb, out_dtype=jnp.float32)
    )
    assert jnp.allclose(outb, ref2, atol=0.5, rtol=0.05), "mismatch (bf16)"

    print("KERNEL_OK")
</pallas_src>

<mosaic_0001>
module attributes {stable_mosaic.version = 11 : i64} {
  func.func @_disc_rowwise_kernel(%arg0: i32, %arg1: i32, %arg2: memref<256x32xf32, #tpu.memory_space<vmem>>, %arg3: memref<256x32xf32, #tpu.memory_space<vmem>>, %arg4: memref<32x32xf32, #tpu.memory_space<vmem>>, %arg5: memref<1x256xf32, #tpu.memory_space<vmem>>, %arg6: memref<1x256xf32, #tpu.memory_space<vmem>>) attributes {dimension_semantics = [#tpu.dimension_semantics<parallel>, #tpu.dimension_semantics<arbitrary>], iteration_bounds = array<i64: 1, 1>, scalar_prefetch = 0 : i64, scratch_operands = 1 : i64, tpu.core_type = #tpu.core_type<tc>, window_params = [{transform_indices = @transform_0, window_bounds = array<i64: 256, 32>}, {transform_indices = @transform_1, window_bounds = array<i64: 256, 32>}, {pipeline_mode = #tpu.pipeline_mode<synchronous>, transform_indices = @transform_2, window_bounds = array<i64: 32, 32>}, {transform_indices = @transform_3, window_bounds = array<i64: 1, 256>}]} {
    %c0_i32 = arith.constant 0 : i32
    %0 = arith.cmpi eq, %arg1, %c0_i32 : i32
    %1 = arith.extui %0 : i1 to i32
    %c0_i32_0 = arith.constant 0 : i32
    %2 = arith.cmpi ne, %1, %c0_i32_0 : i32
    scf.if %2 {
      %cst_13 = arith.constant 0.000000e+00 : f32
      %16 = vector.broadcast %cst_13 : f32 to vector<1x256xf32>
      %c0_14 = arith.constant 0 : index
      %c0_15 = arith.constant 0 : index
      %17 = vector.load %arg6[%c0_14, %c0_15] : memref<1x256xf32, #tpu.memory_space<vmem>>, vector<1x256xf32>
      tpu.vector_store %arg6[%c0_14, %c0_15], %16 {strides = array<i32>} : memref<1x256xf32, #tpu.memory_space<vmem>>, vector<1x256xf32>,
    } else {
    }
    %c0 = arith.constant 0 : index
    %c0_1 = arith.constant 0 : index
    %3 = vector.load %arg3[%c0, %c0_1] : memref<256x32xf32, #tpu.memory_space<vmem>>, vector<256x32xf32>
    %c0_2 = arith.constant 0 : index
    %c0_3 = arith.constant 0 : index
    %4 = vector.load %arg4[%c0_2, %c0_3] : memref<32x32xf32, #tpu.memory_space<vmem>>, vector<32x32xf32>
    %cst = arith.constant dense<0.000000e+00> : vector<256x32xf32>
    %5 = tpu.matmul %3, %4, %cst {dimension_numbers = #tpu.dot_dimension_numbers<[1], [0], [0], [1], [0, 0, 1, 1], [], []>} : vector<256x32xf32>, vector<32x32xf32>, vector<256x32xf32> -> vector<256x32xf32>
    %c0_4 = arith.constant 0 : index
    %c0_5 = arith.constant 0 : index
    %6 = vector.load %arg2[%c0_4, %c0_5] : memref<256x32xf32, #tpu.memory_space<vmem>>, vector<256x32xf32>
    %7 = arith.mulf %6, %5 : vector<256x32xf32>
    %c0_6 = arith.constant 0 : index
    %c0_7 = arith.constant 0 : index
    %8 = vector.load %arg6[%c0_6, %c0_7] : memref<1x256xf32, #tpu.memory_space<vmem>>, vector<1x256xf32>
    %cst_8 = arith.constant dense<0.000000e+00> : vector<256xf32>
    %9 = vector.multi_reduction <add>, %7, %cst_8 [1] : vector<256x32xf32> to vector<256xf32>
    %10 = vector.shape_cast %9 : vector<256xf32> to vector<1x256xf32>
    %11 = arith.addf %8, %10 : vector<1x256xf32>
    %c0_9 = arith.constant 0 : index
    %c0_10 = arith.constant 0 : index
    %12 = vector.load %arg6[%c0_9, %c0_10] : memref<1x256xf32, #tpu.memory_space<vmem>>, vector<1x256xf32>
    tpu.vector_store %arg6[%c0_9, %c0_10], %11 {strides = array<i32>} : memref<1x256xf32, #tpu.memory_space<vmem>>, vector<1x256xf32>,
    %c0_i32_11 = arith.constant 0 : i32
    %13 = arith.cmpi eq, %arg1, %c0_i32_11 : i32
    %14 = arith.extui %13 : i1 to i32
    %c0_i32_12 = arith.constant 0 : i32
    %15 = arith.cmpi ne, %14, %c0_i32_12 : i32
    scf.if %15 {
      %c0_13 = arith.constant 0 : index
      %c0_14 = arith.constant 0 : index
      %16 = vector.load %arg6[%c0_13, %c0_14] : memref<1x256xf32, #tpu.memory_space<vmem>>, vector<1x256xf32>
      %c0_15 = arith.constant 0 : index
      %c0_16 = arith.constant 0 : index
      %17 = vector.load %arg5[%c0_15, %c0_16] : memref<1x256xf32, #tpu.memory_space<vmem>>, vector<1x256xf32>
      tpu.vector_store %arg5[%c0_15, %c0_16], %16 {strides = array<i32>} : memref<1x256xf32, #tpu.memory_space<vmem>>, vector<1x256xf32>,
    } else {
    }
    return
  }
  func.func @transform_0(%arg0: i32, %arg1: i32) -> (i32, i32) {
    %c0_i32 = arith.constant 0 : i32
    return %arg0, %arg1 : i32, i32
  }
  func.func @transform_1(%arg0: i32, %arg1: i32) -> (i32, i32) {
    %c0_i32 = arith.constant 0 : i32
    %c0_i32_0 = arith.constant 0 : i32
    return %arg0, %c0_i32 : i32, i32
  }
  func.func @transform_2(%arg0: i32, %arg1: i32) -> (i32, i32) {
    %c0_i32 = arith.constant 0 : i32
    %c0_i32_0 = arith.constant 0 : i32
    return %c0_i32, %arg1 : i32, i32
  }
  func.func @transform_3(%arg0: i32, %arg1: i32) -> (i32, i32) {
    %c0_i32 = arith.constant 0 : i32
    %c0_i32_0 = arith.constant 0 : i32
    return %c0_i32, %arg0 : i32, i32
  }
}

</mosaic_0001>

<bundles_post_ra>
// kernel: tpu_custom_call.1
= control target key start
LH: loop header
LB: loop body
LE: loop exit
PB: predicated region body
PF: predicated region fallthrough
CT: control target
= control target key end

     0   :  { %8 = vsyncpa [#allocation4], 0  ;;  %s4621_s0 = inlined_call_operand.hbm [shape: f32[8,32], index: 0, kind: input, shape index: {}]   ;;  %s4622_s1 = inlined_call_operand.hbm [shape: f32[8,32], index: 1, kind: input, shape index: {}]   ;;  %s4623_s2 = inlined_call_operand.hbm [shape: f32[32,32], index: 2, kind: input, shape index: {}]   ;;  %s4624_s3 = inlined_call_operand.hbm [shape: f32[1,8], index: 3, kind: output, shape index: {}]  }
   0x1   :  { %9 = vsyncpa [#allocation7], 0 }
   0x2   :  { %10 = vsyncpa [#allocation5], 0 }
   0x3   :  { %15 = vsyncadd [#allocation4], 3968  ;;  %s3778_s12 = smov [#allocation3]   ;;  %s3684_s16 = scalar_lea.hbm %s4621_s0, 128 }
   0x4   :  { %s16_s13 = sshll.u32 %s3778_s12, 4  ;;  %p3685_p0 = scmp.ne.s32.totalorder %s4621_s0, %s3684_s16  ;;  %s17_s13 = int_to_ptr.vmem [resolvable:$true] %s16_s13 }
   0x5   :  { %p3688_p1 = scmp.lt.u32.totalorder %s3684_s16, %s4621_s0 }
   0x7   :  { %p3690_p2 = pnand %p3688_p1, %p3685_p0 }
   0x9   :  { %3693 = shalt.err (!%p3690_p2)
}
   0xa   :  { %s3694_s21 = scalar_lea.vmem %s17_s13, 128  ;;  %s3698_s22 = scalar_lea.vmem %s17_s13, 4096 }
   0xb   :  { %p3695_p3 = scmp.ne.s32.totalorder %s17_s13, %s3694_s21  ;;  %p3699_p4 = scmp.lt.s32.totalorder %s17_s13, %s17_s13 }
   0xc   :  { %p3700_p5 = scmp.lt.s32.totalorder %s3698_s22, %s3694_s21 }
   0xe   :  { %p3701_p6 = por %p3700_p5, %p3699_p4 }
  0x10   :  { %p3702_p7 = pnand %p3701_p6, %p3695_p3 }
  0x12   :  { %3705 = shalt.err (!%p3702_p7)
}
  0x13   :  { %s3779_s23 = smov 128   ;;  %s3780_s24 = smov 8  }
  0x14   :  { %22 = dma.hbm_to_vmem [thread:$0]  %s4621_s0, 128, %s17_s13, [#allocation4], %s3779_s23, %s3779_s23, %s3780_s24  }
  0x15   :  { %27 = vsyncadd [#allocation7], 3968  ;;  %s3781_s27 = smov [#allocation6]   ;;  %s3782_s29 = smov [#allocation8]  }
  0x16   :  { %s28_s28 = sshll.u32 %s3781_s27, 4  ;;  %s40_s30 = sshll.u32 %s3782_s29, 4  ;;  %s29_s28 = int_to_ptr.vmem [resolvable:$true] %s28_s28  ;;  %s3822_s30 = int_to_ptr.vmem [resolvable:$true] %s40_s30 }
  0x17   :  { %s3706_s6 = scalar_lea.hbm %s4622_s1, 128 }
  0x18   :  { %p3707_p8 = scmp.ne.s32.totalorder %s4622_s1, %s3706_s6  ;;  %p3710_p9 = scmp.lt.u32.totalorder %s3706_s6, %s4622_s1 }
  0x1a   :  { %p3712_p10 = pnand %p3710_p9, %p3707_p8 }
  0x1c   :  { %3715 = shalt.err (!%p3712_p10)
}
  0x1d   :  { %s3716_s0 = scalar_lea.vmem %s29_s28, 128  ;;  %s3720_s11 = scalar_lea.vmem %s29_s28, 4096 }
  0x1e   :  { %p3717_p11 = scmp.ne.s32.totalorder %s29_s28, %s3716_s0  ;;  %p3721_p12 = scmp.lt.s32.totalorder %s29_s28, %s29_s28 }
  0x1f   :  { %p3722_p13 = scmp.lt.s32.totalorder %s3720_s11, %s3716_s0 }
  0x21   :  { %p3723_p0 = por %p3722_p13, %p3721_p12 }
  0x23   :  { %p3724_p1 = pnand %p3723_p0, %p3717_p11 }
  0x25   :  { %3727 = shalt.err (!%p3724_p1)
}
  0x26   :  { %34 = dma.hbm_to_vmem [thread:$0]  %s4622_s1, 128, %s29_s28, [#allocation7], %s3779_s23, %s3779_s23, %s3780_s24  }
  0x27   :  { %s3728_s16 = scalar_lea.hbm %s4623_s2, 512 }
  0x28   :  { %p3729_p2 = scmp.ne.s32.totalorder %s4623_s2, %s3728_s16  ;;  %p3732_p3 = scmp.lt.u32.totalorder %s3728_s16, %s4623_s2 }
  0x2a   :  { %p3734_p4 = pnand %p3732_p3, %p3729_p2 }
  0x2c   :  { %3737 = shalt.err (!%p3734_p4)
}
  0x2d   :  { %s3738_s21 = scalar_lea.vmem %s3822_s30, 512  ;;  %p3743_p6 = scmp.lt.s32.totalorder %s3822_s30, %s3822_s30 }
  0x2e   :  { %p3739_p5 = scmp.ne.s32.totalorder %s3822_s30, %s3738_s21  ;;  %p3744_p7 = scmp.lt.s32.totalorder %s3738_s21, %s3738_s21 }
  0x30   :  { %p3745_p8 = por %p3744_p7, %p3743_p6 }
  0x32   :  { %p3746_p9 = pnand %p3745_p8, %p3739_p5 }
  0x34   :  { %3749 = shalt.err (!%p3746_p9)
}
  0x35   :  { %46 = dma.hbm_to_vmem [thread:$0]  %s4623_s2, 512, %s3822_s30, [#allocation7], %s3779_s23, %s3779_s23, %s3780_s24  }
  0x36   :  { %3772 = dma.done.wait [#allocation4], 4096  }
  0x37   :  { %3773 = vsyncadd [#allocation4], 4294963200 }
  0x38   :  { %3774 = dma.done.wait [#allocation7], 4608  }
  0x39   :  { %3775 = vsyncadd [#allocation7], 4294962688  ;;  %vm101_vm0 = vcmask 261120   ;;  %v97_v0 = vld [vmem:[#allocation8] sm:$0xff]  ;;  %v98_v1 = vld [vmem:[#allocation8 + $0x8] sm:$0xff]  ;;  %vm3315_vm2 = vcmask 130112  }
  0x3a   :  { %v99_v2 = vld [vmem:[#allocation8 + $0x10] sm:$0xff]  ;;  %v3661_v3 = vpack.c.bf16 %v98_v1, %v97_v0  ;;  %v100_v4 = vld [vmem:[#allocation8 + $0x18] sm:$0xff]  ;;  %v65_v5 = vld [vmem:[#allocation6] sm:$0xff]  ;;  %vm3322_vm3 = vcmask 195712   ;;  %vm3329_vm4 = vcmask 261312   ;;  %vm3336_vm5 = vcmask 326912  }
  0x3b   :  { %v81_v6 = vld [vmem:[#allocation6 + $0x80] sm:$0xff]  ;;  %v3665_v7 = vpack.c.bf16 %v100_v4, %v99_v2  ;;  %3613 = vmatprep.mubr.msk.f32.mxu0 %vm101_vm0, %v65_v5  ;;  %v66_v8 = vld [vmem:[#allocation6 + $0x8] sm:$0xff]  ;;  %v67_v10 = vld [vmem:[#allocation6 + $0x10] sm:$0xff]  ;;  %vm3343_vm6 = vcmask 392512   ;;  %vm3350_vm7 = vcmask 458112   ;;  %vm3357_vm8 = vcmask 523712  }
  0x3c   :  { %3637 = vmatprep.mubr.msk.f32.mxu1 %vm101_vm0, %v81_v6  ;;  %3662 = vmatprep.subr.bf16.mxu0 %v3661_v3  ;;  %v82_v9 = vld [vmem:[#allocation6 + $0x88] sm:$0xff]  ;;  %v83_v11 = vld [vmem:[#allocation6 + $0x90] sm:$0xff]  ;;  %v68_v12 = vld [vmem:[#allocation6 + $0x18] sm:$0xff]  ;;  %vm3364_vm9 = vcmask 589312   ;;  %vm3371_vm10 = vcmask 654912   ;;  %vm3378_vm11 = vcmask 720512  }
  0x3d   :  { %3669 = vmatprep.subr.bf16.mxu1 %v3661_v3  ;;  %3664 = vmatpush3.bf16.msra.mxu0 %v3661_v3  ;;  %v84_v13 = vld [vmem:[#allocation6 + $0x98] sm:$0xff]  ;;  %v69_v14 = vld [vmem:[#allocation6 + $0x20] sm:$0xff]  ;;  %v70_v16 = vld [vmem:[#allocation6 + $0x28] sm:$0xff]  ;;  %vm3385_vm12 = vcmask 786112   ;;  %vm3392_vm13 = vcmask 851712   ;;  %vm3399_vm14 = vcmask 917312  }
  0x3e   :  { %3671 = vmatpush3.bf16.msra.mxu1 %v3661_v3  ;;  %3666 = vmatprep.subr.bf16.mxu0 %v3665_v7  ;;  %v85_v15 = vld [vmem:[#allocation6 + $0xa0] sm:$0xff]  ;;  %v86_v17 = vld [vmem:[#allocation6 + $0xa8] sm:$0xff]  ;;  %v71_v18 = vld [vmem:[#allocation6 + $0x30] sm:$0xff]  ;;  %vm3406_vm15 = vcmask 982912  }
  0x3f   :  { %3670 = vmatprep.subr.bf16.mxu1 %v3665_v7  ;;  %v87_v19 = vld [vmem:[#allocation6 + $0xb0] sm:$0xff]  ;;  %v72_v20 = vld [vmem:[#allocation6 + $0x38] sm:$0xff]  ;;  %v73_v22 = vld [vmem:[#allocation6 + $0x40] sm:$0xff] }
  0x40   :  { %v88_v21 = vld [vmem:[#allocation6 + $0xb8] sm:$0xff]  ;;  %v89_v23 = vld [vmem:[#allocation6 + $0xc0] sm:$0xff]  ;;  %v74_v24 = vld [vmem:[#allocation6 + $0x48] sm:$0xff] }
  0x41   :  { %3668 = vmatpush3.bf16.msra.mxu0 %v3665_v7  ;;  %v90_v25 = vld [vmem:[#allocation6 + $0xc8] sm:$0xff]  ;;  %v75_v26 = vld [vmem:[#allocation6 + $0x50] sm:$0xff]  ;;  %v76_v28 = vld [vmem:[#allocation6 + $0x58] sm:$0xff] }
  0x42   :  { %3672 = vmatpush3.bf16.msra.mxu1 %v3665_v7  ;;  %v91_v27 = vld [vmem:[#allocation6 + $0xd0] sm:$0xff]  ;;  %v92_v29 = vld [vmem:[#allocation6 + $0xd8] sm:$0xff]  ;;  %v77_v30 = vld [vmem:[#allocation6 + $0x60] sm:$0xff] }
  0x43   :  { %v93_v31 = vld [vmem:[#allocation6 + $0xe0] sm:$0xff]  ;;  %v78_v32 = vld [vmem:[#allocation6 + $0x68] sm:$0xff]  ;;  %v95_v34 = vld [vmem:[#allocation6 + $0xf0] sm:$0xff] }
  0x44   :  { %3614 = vmatmul.mubr.msk.f32.vlgmr.msra.gmra.mrb[0].mxu0 %vm101_vm0, %v66_v8  ;;  %v94_v33 = vld [vmem:[#allocation6 + $0xe8] sm:$0xff]  ;;  %v79_v35 = vld [vmem:[#allocation6 + $0x70] sm:$0xff]  ;;  %v96_v36 = vld [vmem:[#allocation6 + $0xf8] sm:$0xff] }
  0x45   :  { %3638 = vmatmul.mubr.msk.f32.vlgmr.msra.gmra.mrb[0].mxu1 %vm101_vm0, %v82_v9  ;;  %3616 = vmatprep.mubr.msk.f32.mxu0 %vm101_vm0, %v67_v10  ;;  %v80_v37 = vld [vmem:[#allocation6 + $0x78] sm:$0xff]  ;;  %v424_v38 = vld [vmem:[#allocation3 + $0x8] sm:$0xff]  ;;  %v423_v42 = vld [vmem:[#allocation3] sm:$0xff] }
  0x46   :  { %3640 = vmatprep.mubr.msk.f32.mxu1 %vm101_vm0, %v83_v11  ;;  %v440_v39 = vld [vmem:[#allocation3 + $0x88] sm:$0xff]  ;;  %v426_v47 = vld [vmem:[#allocation3 + $0x18] sm:$0xff]  ;;  %v439_v52 = vld [vmem:[#allocation3 + $0x80] sm:$0xff] }
  0x47   :  { %v442_v48 = vld [vmem:[#allocation3 + $0x98] sm:$0xff]  ;;  %v441_v59 = vld [vmem:[#allocation3 + $0x90] sm:$0xff]  ;;  %v428_v6 = vld [vmem:[#allocation3 + $0x28] sm:$0xff] }
  0x48   :  { %3617 = vmatmul.mubr.msk.f32.gmra.mrb[2].mxu0 %vm101_vm0, %v68_v12  ;;  %v425_v63 = vld [vmem:[#allocation3 + $0x10] sm:$0xff]  ;;  %v427_v7 = vld [vmem:[#allocation3 + $0x20] sm:$0xff] }
  0x49   :  { %3641 = vmatmul.mubr.msk.f32.gmra.mrb[2].mxu1 %vm101_vm0, %v84_v13  ;;  %3619 = vmatprep.mubr.msk.f32.mxu0 %vm101_vm0, %v69_v14 }
  0x4a   :  { %3643 = vmatprep.mubr.msk.f32.mxu1 %vm101_vm0, %v85_v15 }
  0x4c   :  { %3620 = vmatmul.mubr.msk.f32.gmra.mrb[4].mxu0 %vm101_vm0, %v70_v16 }
  0x4d   :  { %3644 = vmatmul.mubr.msk.f32.gmra.mrb[4].mxu1 %vm101_vm0, %v86_v17  ;;  %3622 = vmatprep.mubr.msk.f32.mxu0 %vm101_vm0, %v71_v18  ;;  %v444_v17 = vld [vmem:[#allocation3 + $0xa8] sm:$0xff]  ;;  %v443_v18 = vld [vmem:[#allocation3 + $0xa0] sm:$0xff] }
  0x4e   :  { %3646 = vmatprep.mubr.msk.f32.mxu1 %vm101_vm0, %v87_v19 }
  0x50   :  { %3623 = vmatmul.mubr.msk.f32.gmra.mrb[6].mxu0 %vm101_vm0, %v72_v20 }
  0x51   :  { %3647 = vmatmul.mubr.msk.f32.gmra.mrb[6].mxu1 %vm101_vm0, %v88_v21  ;;  %3625 = vmatprep.mubr.msk.f32.mxu0 %vm101_vm0, %v73_v22 }
  0x52   :  { %3649 = vmatprep.mubr.msk.f32.mxu1 %vm101_vm0, %v89_v23 }
  0x54   :  { %3626 = vmatmul.mubr.msk.f32.gmra.mrb[8].mxu0 %vm101_vm0, %v74_v24 }
  0x55   :  { %3650 = vmatmul.mubr.msk.f32.gmra.mrb[8].mxu1 %vm101_vm0, %v90_v25  ;;  %3628 = vmatprep.mubr.msk.f32.mxu0 %vm101_vm0, %v75_v26 }
  0x56   :  { %3652 = vmatprep.mubr.msk.f32.mxu1 %vm101_vm0, %v91_v27 }
  0x58   :  { %3629 = vmatmul.mubr.msk.f32.gmra.mrb[10].mxu0 %vm101_vm0, %v76_v28  ;;  %v430_v28 = vld [vmem:[#allocation3 + $0x38] sm:$0xff] }
  0x59   :  { %3653 = vmatmul.mubr.msk.f32.gmra.mrb[10].mxu1 %vm101_vm0, %v92_v29  ;;  %3631 = vmatprep.mubr.msk.f32.mxu0 %vm101_vm0, %v77_v30  ;;  %v429_v29 = vld [vmem:[#allocation3 + $0x30] sm:$0xff] }
  0x5a   :  { %3655 = vmatprep.mubr.msk.f32.mxu1 %vm101_vm0, %v93_v31 }
  0x5c   :  { %3632 = vmatmul.mubr.msk.f32.gmra.mrb[12].mxu0 %vm101_vm0, %v78_v32 }
  0x5d   :  { %3656 = vmatmul.mubr.msk.f32.gmra.mrb[12].mxu1 %vm101_vm0, %v94_v33  ;;  %3634 = vmatprep.mubr.msk.f32.mxu0 %vm101_vm0, %v79_v35 }
  0x5e   :  { %3658 = vmatprep.mubr.msk.f32.mxu1 %vm101_vm0, %v95_v34  ;;  %v446_v34 = vld [vmem:[#allocation3 + $0xb8] sm:$0xff] }
  0x60   :  { %3635 = vmatmul.mubr.msk.f32.gmra.mrb[14].mxu0 %vm101_vm0, %v80_v37 }
  0x61   :  { %3659 = vmatmul.mubr.msk.f32.gmra.mrb[14].mxu1 %vm101_vm0, %v96_v36 }
 0x117   :  { %v3615_v40 = vpop.f32.mrb[0].mxu0 }
 0x118   :  { %v3639_v41 = vpop.f32.mrb[0].mxu1  ;;  %v456_v43 = vmul.f32 %v3615_v40, %v424_v38  ;;  %v264_v45 = vpop.f32.mrb[1].mxu0 }
 0x119   :  { %v472_v44 = vmul.f32 %v3639_v41, %v440_v39  ;;  %v344_v46 = vpop.f32.mrb[1].mxu1  ;;  %v455_v49 = vmul.f32 %v423_v42, %v264_v45  ;;  %v445_v39 = vld [vmem:[#allocation3 + $0xb0] sm:$0xff] }
 0x11a   :  { %v491_v51 = vsel %vm101_vm0, %v456_v43, 0.0  ;;  %v471_v60 = vmul.f32 %v439_v52, %v344_v46 }
 0x11b   :  { %v539_v50 = vsel %vm101_vm0, %v472_v44, 0.0  ;;  %492 = vadd.xlane.f32.xlu0 %v491_v51  ;;  %v3618_v53 = vpop.f32.mrb[2].mxu0  ;;  %v488_v61 = vsel %vm101_vm0, %v455_v49, 0.0  ;;  %v431_v49 = vld [vmem:[#allocation3 + $0x40] sm:$0xff] }
 0x11c   :  { %540 = vadd.xlane.f32.xlu1 %v539_v50  ;;  %v3642_v54 = vpop.f32.mrb[2].mxu1  ;;  %v458_v55 = vmul.f32 %v3618_v53, %v426_v47  ;;  %v274_v57 = vpop.f32.mrb[3].mxu0  ;;  %v536_v9 = vsel %vm101_vm0, %v471_v60, 0.0  ;;  %v3783_v50 = vmov 0   ;;  %v447_v60 = vld [vmem:[#allocation3 + $0xc0] sm:$0xff] }
 0x11d   :  { %v474_v56 = vmul.f32 %v3642_v54, %v442_v48  ;;  %v354_v58 = vpop.f32.mrb[3].mxu1  ;;  %v457_v8 = vmul.f32 %v425_v63, %v274_v57  ;;  %v432_v48 = vld [vmem:[#allocation3 + $0x48] sm:$0xff]  ;;  %3683 = vset.pattern.permute.xlu0 %v3783_v50  ;;  %3682 = vset.pattern.permute.xlu1 %v3783_v50 }
 0x11e   :  { %v497_v62 = vsel %vm101_vm0, %v458_v55, 0.0  ;;  %v473_v2 = vmul.f32 %v441_v59, %v354_v58  ;;  %v448_v59 = vld [vmem:[#allocation3 + $0xc8] sm:$0xff] }
 0x11f   :  { %489 = vadd.xlane.f32.xlu0 %v488_v61  ;;  %v3621_v0 = vpop.f32.mrb[4].mxu0  ;;  %v545_v3 = vsel %vm101_vm0, %v474_v56, 0.0  ;;  %v494_v19 = vsel %vm101_vm0, %v457_v8, 0.0  ;;  %v449_v8 = vld [vmem:[#allocation3 + $0xd0] sm:$0xff] }
 0x120   :  { %498 = vadd.xlane.f32.xlu1 %v497_v62  ;;  %v3645_v1 = vpop.f32.mrb[4].mxu1  ;;  %v284_v4 = vpop.f32.mrb[5].mxu0  ;;  %v542_v12 = vsel %vm101_vm0, %v473_v2, 0.0  ;;  %v460_v13 = vmul.f32 %v3621_v0, %v428_v6  ;;  %v433_v2 = vld [vmem:[#allocation3 + $0x50] sm:$0xff] }
 0x121   :  { %v364_v5 = vpop.f32.mrb[5].mxu1  ;;  %v459_v14 = vmul.f32 %v427_v7, %v284_v4  ;;  %v476_v22 = vmul.f32 %v3645_v1, %v444_v17  ;;  %v434_v1 = vld [vmem:[#allocation3 + $0x58] sm:$0xff] }
 0x122   :  { %v503_v23 = vsel %vm101_vm0, %v460_v13, 0.0  ;;  %v475_v24 = vmul.f32 %v443_v18, %v364_v5  ;;  %v450_v7 = vld [vmem:[#allocation3 + $0xd8] sm:$0xff]  ;;  %v436_v13 = vld [vmem:[#allocation3 + $0x68] sm:$0xff] }
 0x123   :  { %537 = vadd.xlane.f32.xlu0 %v536_v9  ;;  %v3624_v10 = vpop.f32.mrb[6].mxu0  ;;  %v500_v25 = vsel %vm101_vm0, %v459_v14, 0.0  ;;  %v551_v32 = vsel %vm101_vm0, %v476_v22, 0.0  ;;  %v435_v14 = vld [vmem:[#allocation3 + $0x60] sm:$0xff] }
 0x124   :  { %546 = vadd.xlane.f32.xlu1 %v545_v3  ;;  %v3648_v11 = vpop.f32.mrb[6].mxu1  ;;  %v294_v15 = vpop.f32.mrb[7].mxu0  ;;  %v462_v33 = vmul.f32 %v3624_v10, %v430_v28  ;;  %v548_v35 = vsel %vm101_vm0, %v475_v24, 0.0 }
 0x125   :  { %v374_v16 = vpop.f32.mrb[7].mxu1  ;;  %v461_v36 = vmul.f32 %v429_v29, %v294_v15  ;;  %v478_v40 = vmul.f32 %v3648_v11, %v446_v34 }
 0x126   :  { %v509_v43 = vsel %vm101_vm0, %v462_v33, 0.0  ;;  %v477_v44 = vmul.f32 %v445_v39, %v374_v16  ;;  %v60_v39 = vlaneseq }
 0x127   :  { %543 = vadd.xlane.f32.xlu0 %v542_v12  ;;  %v3627_v20 = vpop.f32.mrb[8].mxu0  ;;  %v506_v45 = vsel %vm101_vm0, %v461_v36, 0.0  ;;  %v557_v53 = vsel %vm101_vm0, %v478_v40, 0.0  ;;  %v3784_v40 = vmov 1966171168  }
 0x128   :  { %495 = vadd.xlane.f32.xlu1 %v494_v19  ;;  %v3651_v21 = vpop.f32.mrb[8].mxu1  ;;  %v304_v26 = vpop.f32.mrb[9].mxu0  ;;  %v464_v54 = vmul.f32 %v3627_v20, %v432_v48  ;;  %v554_v55 = vsel %vm101_vm0, %v477_v44, 0.0  ;;  %v452_v19 = vld [vmem:[#allocation3 + $0xe8] sm:$0xff]  ;;  %v451_v20 = vld [vmem:[#allocation3 + $0xe0] sm:$0xff]  ;;  %vm4502_vm1 = vcmp.lt.s32.totalorder %v60_v39, 256 }
 0x129   :  { %v384_v27 = vpop.f32.mrb[9].mxu1  ;;  %v463_v56 = vmul.f32 %v431_v49, %v304_v26  ;;  %v480_v61 = vmul.f32 %v3651_v21, %v448_v59  ;;  %v437_v26 = vld [vmem:[#allocation3 + $0x70] sm:$0xff] }
 0x12a   :  { %v515_v62 = vsel %vm101_vm0, %v464_v54, 0.0  ;;  %v479_v63 = vmul.f32 %v447_v60, %v384_v27 }
 0x12b   :  { %501 = vadd.xlane.f32.xlu0 %v500_v25  ;;  %v3630_v30 = vpop.f32.mrb[10].mxu0  ;;  %v512_v0 = vsel %vm101_vm0, %v463_v56, 0.0  ;;  %v563_v3 = vsel %vm101_vm0, %v480_v61, 0.0  ;;  %v454_v25 = vld [vmem:[#allocation3 + $0xf8] sm:$0xff] }
 0x12c   :  { %504 = vadd.xlane.f32.xlu1 %v503_v23  ;;  %v3654_v31 = vpop.f32.mrb[10].mxu1  ;;  %v314_v37 = vpop.f32.mrb[11].mxu0  ;;  %v466_v4 = vmul.f32 %v3630_v30, %v434_v1  ;;  %v560_v5 = vsel %vm101_vm0, %v479_v63, 0.0 }
 0x12d   :  { %v394_v38 = vpop.f32.mrb[11].mxu1  ;;  %v465_v6 = vmul.f32 %v433_v2, %v314_v37  ;;  %v482_v9 = vmul.f32 %v3654_v31, %v450_v7  ;;  %v453_v31 = vld [vmem:[#allocation3 + $0xf0] sm:$0xff] }
 0x12e   :  { %v521_v10 = vsel %vm101_vm0, %v466_v4, 0.0  ;;  %v481_v11 = vmul.f32 %v449_v8, %v394_v38 }
 0x12f   :  { %549 = vadd.xlane.f32.xlu0 %v548_v35  ;;  %v3633_v41 = vpop.f32.mrb[12].mxu0  ;;  %v518_v12 = vsel %vm101_vm0, %v465_v6, 0.0  ;;  %v569_v15 = vsel %vm101_vm0, %v482_v9, 0.0 }
 0x130   :  { %552 = vadd.xlane.f32.xlu1 %v551_v32  ;;  %v3657_v42 = vpop.f32.mrb[12].mxu1  ;;  %v324_v46 = vpop.f32.mrb[13].mxu0  ;;  %v468_v16 = vmul.f32 %v3633_v41, %v436_v13  ;;  %v566_v17 = vsel %vm101_vm0, %v481_v11, 0.0  ;;  %v438_v32 = vld [vmem:[#allocation3 + $0x78] sm:$0xff]  ;;  %v1645_v41 = vunpack.c.l.s4 %v3784_v40 }
 0x131   :  { %v404_v47 = vpop.f32.mrb[13].mxu1  ;;  %v467_v18 = vmul.f32 %v435_v14, %v324_v46  ;;  %v484_v21 = vmul.f32 %v3657_v42, %v452_v19  ;;  %v3924_v42 = vshrl.u32 %v60_v39, 7 }
 0x132   :  { %v527_v22 = vsel %vm101_vm0, %v468_v16, 0.0  ;;  %v483_v23 = vmul.f32 %v451_v20, %v404_v47 }
 0x133   :  { %507 = vadd.xlane.f32.xlu0 %v506_v45  ;;  %v3636_v52 = vpop.f32.mrb[14].mxu0  ;;  %v524_v24 = vsel %vm101_vm0, %v467_v18, 0.0  ;;  %v575_v28 = vsel %vm101_vm0, %v484_v21, 0.0  ;;  %v3927_v44 = vsub.s32 0, %v3924_v42  ;;  %v3930_v45 = vsub.s32 1, %v3924_v42 }
 0x134   :  { %510 = vadd.xlane.f32.xlu1 %v509_v43  ;;  %v3660_v51 = vpop.f32.mrb[14].mxu1  ;;  %v334_v58 = vpop.f32.mrb[15].mxu0  ;;  %v572_v29 = vsel %vm101_vm0, %v483_v23, 0.0  ;;  %v470_v35 = vmul.f32 %v3636_v52, %v438_v32  ;;  %v1646_v43 = vunpack.c.0.s8 %v1645_v41  ;;  %v3933_v46 = vsub.s32 2, %v3924_v42 }
 0x135   :  { %v414_v57 = vpop.f32.mrb[15].mxu1  ;;  %v486_v27 = vmul.f32 %v3660_v51, %v454_v25  ;;  %v469_v30 = vmul.f32 %v437_v26, %v334_v58  ;;  %v3936_v47 = vsub.s32 3, %v3924_v42  ;;  %v3939_v48 = vsub.s32 4, %v3924_v42 }
 0x136   :  { %v485_v33 = vmul.f32 %v453_v31, %v414_v57  ;;  %v533_v38 = vsel %vm101_vm0, %v470_v35, 0.0  ;;  %v3942_v49 = vsub.s32 5, %v3924_v42  ;;  %v3945_v50 = vsub.s32 6, %v3924_v42 }
 0x137   :  { %555 = vadd.xlane.f32.xlu0 %v554_v55  ;;  %v581_v34 = vsel %vm101_vm0, %v486_v27, 0.0  ;;  %v530_v36 = vsel %vm101_vm0, %v469_v30, 0.0  ;;  %v3948_v51 = vsub.s32 7, %v3924_v42  ;;  %v3951_v54 = vsub.s32 %v1646_v43, %v3924_v42 }
 0x138   :  { %558 = vadd.xlane.f32.xlu1 %v557_v53  ;;  %v578_v37 = vsel %vm101_vm0, %v485_v33, 0.0  ;;  %vm3413_vm0 = vcmask 1048512  }
 0x13b   :  { %513 = vadd.xlane.f32.xlu0 %v512_v0 }
 0x13c   :  { %516 = vadd.xlane.f32.xlu1 %v515_v62 }
 0x13f   :  { %561 = vadd.xlane.f32.xlu0 %v560_v5 }
 0x140   :  { %564 = vadd.xlane.f32.xlu1 %v563_v3 }
 0x143   :  { %519 = vadd.xlane.f32.xlu0 %v518_v12 }
 0x144   :  { %522 = vadd.xlane.f32.xlu1 %v521_v10 }
 0x147   :  { %567 = vadd.xlane.f32.xlu0 %v566_v17 }
 0x148   :  { %570 = vadd.xlane.f32.xlu1 %v569_v15 }
 0x14b   :  { %525 = vadd.xlane.f32.xlu0 %v524_v24 }
 0x14c   :  { %528 = vadd.xlane.f32.xlu1 %v527_v22 }
 0x14f   :  { %573 = vadd.xlane.f32.xlu0 %v572_v29 }
 0x150   :  { %576 = vadd.xlane.f32.xlu1 %v575_v28 }
 0x153   :  { %531 = vadd.xlane.f32.xlu0 %v530_v36 }
 0x154   :  { %582 = vadd.xlane.f32.xlu1 %v581_v34 }
 0x157   :  { %534 = vadd.xlane.f32.xlu0 %v533_v38 }
 0x158   :  { %579 = vadd.xlane.f32.xlu1 %v578_v37 }
 0x1a8   :  { %v493_v53 = vpop.xlane.xlu0 %492 }
 0x1a9   :  { %v541_v52 = vpop.xlane.xlu1 %540  ;;  %v651_v55 = vrot.slane %v493_v53, %v3927_v44  ;;  %v655_v56 = vrot.slane %v493_v53, %v3930_v45  ;;  %v659_v57 = vrot.slane %v493_v53, %v3933_v46  ;;  %v663_v58 = vrot.slane %v493_v53, %v3936_v47 }
 0x1aa   :  { %v667_v59 = vrot.slane %v493_v53, %v3939_v48  ;;  %v671_v60 = vrot.slane %v493_v53, %v3942_v49  ;;  %v675_v61 = vrot.slane %v493_v53, %v3945_v50  ;;  %v679_v62 = vrot.slane %v493_v53, %v3948_v51 }
 0x1ab   :  { %v1689_v63 = vcombine.low %v651_v55, %v655_v56  ;;  %v1690_v0 = vcombine.low %v659_v57, %v663_v58  ;;  %v1163_v1 = vrot.slane %v541_v52, %v3927_v44  ;;  %v1167_v2 = vrot.slane %v541_v52, %v3930_v45 }
 0x1ac   :  { %v490_v3 = vpop.xlane.xlu0 %489  ;;  %v1691_v4 = vcombine.low %v667_v59, %v671_v60  ;;  %v1692_v5 = vcombine.low %v675_v61, %v679_v62  ;;  %v1171_v6 = vrot.slane %v541_v52, %v3933_v46  ;;  %v1175_v7 = vrot.slane %v541_v52, %v3936_v47 }
 0x1ad   :  { %v1699_v8 = vrot.slane %v1689_v63, %v3951_v54  ;;  %v1706_v9 = vrot.slane %v1690_v0, %v3951_v54  ;;  %v1179_v10 = vrot.slane %v541_v52, %v3939_v48  ;;  %v1183_v11 = vrot.slane %v541_v52, %v3942_v49  ;;  %v499_v56 = vpop.xlane.xlu1 %498 }
 0x1ae   :  { %v1713_v12 = vrot.slane %v1691_v4, %v3951_v54  ;;  %v1720_v13 = vrot.slane %v1692_v5, %v3951_v54  ;;  %v1187_v14 = vrot.slane %v541_v52, %v3945_v50  ;;  %v1191_v15 = vrot.slane %v541_v52, %v3948_v51 }
 0x1af   :  { %v1721_v16 = vcombine.low %v1699_v8, %v1706_v9  ;;  %v2473_v17 = vcombine.low %v1163_v1, %v1167_v2  ;;  %v2474_v18 = vcombine.low %v1171_v6, %v1175_v7  ;;  %v2475_v19 = vcombine.low %v1179_v10, %v1183_v11 }
 0x1b0   :  { %v1722_v20 = vcombine.low %v1713_v12, %v1720_v13  ;;  %v2476_v21 = vcombine.low %v1187_v14, %v1191_v15  ;;  %v619_v22 = vrot.slane %v490_v3, %v3927_v44  ;;  %v623_v23 = vrot.slane %v490_v3, %v3930_v45  ;;  %v538_v28 = vpop.xlane.xlu0 %537 }
 0x1b1   :  { %v1729_v24 = vrot.slane %v1721_v16, %v3951_v54  ;;  %v2483_v25 = vrot.slane %v2473_v17, %v3951_v54  ;;  %v2490_v26 = vrot.slane %v2474_v18, %v3951_v54  ;;  %v2497_v27 = vrot.slane %v2475_v19, %v3951_v54  ;;  %v547_v17 = vpop.xlane.xlu1 %546 }
 0x1b2   :  { %v1736_v29 = vrot.slane %v1722_v20, %v3951_v54  ;;  %v2504_v30 = vrot.slane %v2476_v21, %v3951_v54  ;;  %v627_v31 = vrot.slane %v490_v3, %v3933_v46  ;;  %v631_v32 = vrot.slane %v490_v3, %v3936_v47 }
 0x1b3   :  { %v2505_v33 = vcombine.low %v2483_v25, %v2490_v26  ;;  %v635_v34 = vrot.slane %v490_v3, %v3939_v48  ;;  %v639_v35 = vrot.slane %v490_v3, %v3942_v49  ;;  %v643_v36 = vrot.slane %v490_v3, %v3945_v50 }
 0x1b4   :  { %v1737_v37 = vcombine.low %v1729_v24, %v1736_v29  ;;  %v2506_v38 = vcombine.low %v2497_v27, %v2504_v30  ;;  %v647_v40 = vrot.slane %v490_v3, %v3948_v51  ;;  %v1640_v41 = vcombine.low %v619_v22, %v623_v23 }
 0x1b5   :  { %v2513_v43 = vrot.slane %v2505_v33, %v3951_v54  ;;  %v1641_v52 = vcombine.low %v627_v31, %v631_v32  ;;  %v1642_v53 = vcombine.low %v635_v34, %v639_v35  ;;  %v1131_v55 = vrot.slane %v538_v28, %v3927_v44 }
 0x1b6   :  { %3212 = vperm.xlu1 %3682, %v1737_v37   ;;  %v2520_v57 = vrot.slane %v2506_v38, %v3951_v54  ;;  %v1643_v58 = vcombine.low %v643_v36, %v647_v40  ;;  %v1650_v59 = vrot.slane %v1640_v41, %v3951_v54  ;;  %v1135_v60 = vrot.slane %v538_v28, %v3930_v45 }
 0x1b7   :  { %v1657_v61 = vrot.slane %v1641_v52, %v3951_v54  ;;  %v1664_v62 = vrot.slane %v1642_v53, %v3951_v54  ;;  %v1139_v63 = vrot.slane %v538_v28, %v3933_v46  ;;  %v1143_v0 = vrot.slane %v538_v28, %v3936_v47  ;;  %v496_v52 = vpop.xlane.xlu1 %495 }
 0x1b8   :  { %v2521_v1 = vcombine.low %v2513_v43, %v2520_v57  ;;  %v1671_v2 = vrot.slane %v1643_v58, %v3951_v54  ;;  %v1147_v3 = vrot.slane %v538_v28, %v3939_v48  ;;  %v1151_v4 = vrot.slane %v538_v28, %v3942_v49 }
 0x1b9   :  { %v1672_v5 = vcombine.low %v1650_v59, %v1657_v61  ;;  %v1155_v6 = vrot.slane %v538_v28, %v3945_v50  ;;  %v1159_v7 = vrot.slane %v538_v28, %v3948_v51  ;;  %v2424_v8 = vcombine.low %v1131_v55, %v1135_v60 }
 0x1ba   :  { %3260 = vperm.xlu0 %3683, %v2521_v1   ;;  %v1673_v9 = vcombine.low %v1664_v62, %v1671_v2  ;;  %v2425_v10 = vcombine.low %v1139_v63, %v1143_v0  ;;  %v2426_v11 = vcombine.low %v1147_v3, %v1151_v4  ;;  %v715_v12 = vrot.slane %v499_v56, %v3927_v44 }
 0x1bb   :  { %v1680_v13 = vrot.slane %v1672_v5, %v3951_v54  ;;  %v2427_v14 = vcombine.low %v1155_v6, %v1159_v7  ;;  %v2434_v15 = vrot.slane %v2424_v8, %v3951_v54  ;;  %v719_v16 = vrot.slane %v499_v56, %v3930_v45 }
 0x1bc   :  { %v1687_v18 = vrot.slane %v1673_v9, %v3951_v54  ;;  %v2441_v19 = vrot.slane %v2425_v10, %v3951_v54  ;;  %v2448_v20 = vrot.slane %v2426_v11, %v3951_v54  ;;  %v723_v21 = vrot.slane %v499_v56, %v3933_v46  ;;  %v544_v10 = vpop.xlane.xlu0 %543 }
 0x1bd   :  { %v2455_v22 = vrot.slane %v2427_v14, %v3951_v54  ;;  %v727_v23 = vrot.slane %v499_v56, %v3936_v47  ;;  %v731_v24 = vrot.slane %v499_v56, %v3939_v48  ;;  %v735_v25 = vrot.slane %v499_v56, %v3942_v49 }
 0x1be   :  { %v1688_v26 = vcombine.low %v1680_v13, %v1687_v18  ;;  %v2456_v27 = vcombine.low %v2434_v15, %v2441_v19  ;;  %v739_v28 = vrot.slane %v499_v56, %v3945_v50  ;;  %v743_v29 = vrot.slane %v499_v56, %v3948_v51 }
 0x1bf   :  { %v2457_v30 = vcombine.low %v2448_v20, %v2455_v22  ;;  %v1787_v31 = vcombine.low %v715_v12, %v719_v16  ;;  %v1788_v32 = vcombine.low %v723_v21, %v727_v23  ;;  %v1789_v33 = vcombine.low %v731_v24, %v735_v25  ;;  %v505_v23 = vpop.xlane.xlu1 %504 }
 0x1c0   :  { %3209 = vperm.xlu0 %3683, %v1688_v26   ;;  %v2464_v34 = vrot.slane %v2456_v27, %v3951_v54  ;;  %v1790_v35 = vcombine.low %v739_v28, %v743_v29  ;;  %v1227_v36 = vrot.slane %v547_v17, %v3927_v44  ;;  %v1231_v37 = vrot.slane %v547_v17, %v3930_v45 }
 0x1c1   :  { %v2471_v38 = vrot.slane %v2457_v30, %v3951_v54  ;;  %v1797_v40 = vrot.slane %v1787_v31, %v3951_v54  ;;  %v1804_v41 = vrot.slane %v1788_v32, %v3951_v54  ;;  %v1811_v43 = vrot.slane %v1789_v33, %v3951_v54 }
 0x1c2   :  { %v1818_v53 = vrot.slane %v1790_v35, %v3951_v54  ;;  %v1235_v55 = vrot.slane %v547_v17, %v3933_v46  ;;  %v1239_v56 = vrot.slane %v547_v17, %v3936_v47  ;;  %v1243_v57 = vrot.slane %v547_v17, %v3939_v48 }
 0x1c3   :  { %v2472_v58 = vcombine.low %v2464_v34, %v2471_v38  ;;  %v1819_v59 = vcombine.low %v1797_v40, %v1804_v41  ;;  %v1247_v60 = vrot.slane %v547_v17, %v3942_v49  ;;  %v1251_v61 = vrot.slane %v547_v17, %v3945_v50 }
 0x1c4   :  { %v1820_v62 = vcombine.low %v1811_v43, %v1818_v53  ;;  %v1255_v63 = vrot.slane %v547_v17, %v3948_v51  ;;  %v2571_v0 = vcombine.low %v1227_v36, %v1231_v37  ;;  %v2572_v1 = vcombine.low %v1235_v55, %v1239_v56 }
 0x1c5   :  { %3257 = vperm.xlu1 %3682, %v2472_v58   ;;  %v1827_v2 = vrot.slane %v1819_v59, %v3951_v54  ;;  %v2573_v3 = vcombine.low %v1243_v57, %v1247_v60  ;;  %v683_v4 = vrot.slane %v496_v52, %v3927_v44  ;;  %v687_v5 = vrot.slane %v496_v52, %v3930_v45  ;;  %v553_v59 = vpop.xlane.xlu1 %552 }
 0x1c6   :  { %v1834_v6 = vrot.slane %v1820_v62, %v3951_v54  ;;  %v2574_v7 = vcombine.low %v1251_v61, %v1255_v63  ;;  %v2581_v8 = vrot.slane %v2571_v0, %v3951_v54  ;;  %v2588_v9 = vrot.slane %v2572_v1, %v3951_v54 }
 0x1c7   :  { %v2595_v11 = vrot.slane %v2573_v3, %v3951_v54  ;;  %v691_v12 = vrot.slane %v496_v52, %v3933_v46  ;;  %v695_v13 = vrot.slane %v496_v52, %v3936_v47  ;;  %v699_v14 = vrot.slane %v496_v52, %v3939_v48 }
 0x1c8   :  { %v1835_v15 = vcombine.low %v1827_v2, %v1834_v6  ;;  %v2602_v16 = vrot.slane %v2574_v7, %v3951_v54  ;;  %v2603_v17 = vcombine.low %v2581_v8, %v2588_v9  ;;  %v703_v18 = vrot.slane %v496_v52, %v3942_v49 }
 0x1c9   :  { %v707_v19 = vrot.slane %v496_v52, %v3945_v50  ;;  %v711_v20 = vrot.slane %v496_v52, %v3948_v51  ;;  %v1738_v21 = vcombine.low %v683_v4, %v687_v5  ;;  %v1739_v22 = vcombine.low %v691_v12, %v695_v13 }
 0x1ca   :  { %3218 = vperm.xlu1 %3682, %v1835_v15   ;;  %v2604_v24 = vcombine.low %v2595_v11, %v2602_v16  ;;  %v2611_v25 = vrot.slane %v2603_v17, %v3951_v54  ;;  %v1740_v26 = vcombine.low %v699_v14, %v703_v18  ;;  %v1195_v27 = vrot.slane %v544_v10, %v3927_v44 }
 0x1cb   :  { %v1741_v28 = vcombine.low %v707_v19, %v711_v20  ;;  %v1748_v29 = vrot.slane %v1738_v21, %v3951_v54  ;;  %v1755_v30 = vrot.slane %v1739_v22, %v3951_v54  ;;  %v1199_v31 = vrot.slane %v544_v10, %v3930_v45  ;;  %v4074_v20 = vpop.xlane.xlu1 %510 }
 0x1cc   :  { %v2618_v32 = vrot.slane %v2604_v24, %v3951_v54  ;;  %v1762_v33 = vrot.slane %v1740_v26, %v3951_v54  ;;  %v1203_v34 = vrot.slane %v544_v10, %v3933_v46  ;;  %v1207_v35 = vrot.slane %v544_v10, %v3936_v47 }
 0x1cd   :  { %v1769_v36 = vrot.slane %v1741_v28, %v3951_v54  ;;  %v1770_v37 = vcombine.low %v1748_v29, %v1755_v30  ;;  %v1211_v38 = vrot.slane %v544_v10, %v3939_v48  ;;  %v1215_v40 = vrot.slane %v544_v10, %v3942_v49 }
 0x1ce   :  { %v2619_v41 = vcombine.low %v2611_v25, %v2618_v32  ;;  %v1219_v43 = vrot.slane %v544_v10, %v3945_v50  ;;  %v1223_v52 = vrot.slane %v544_v10, %v3948_v51  ;;  %v2522_v53 = vcombine.low %v1195_v27, %v1199_v31 }
 0x1cf   :  { %v1771_v55 = vcombine.low %v1762_v33, %v1769_v36  ;;  %v1778_v56 = vrot.slane %v1770_v37, %v3951_v54  ;;  %v2523_v57 = vcombine.low %v1203_v34, %v1207_v35  ;;  %v2524_v58 = vcombine.low %v1211_v38, %v1215_v40  ;;  %v502_v33 = vpop.xlane.xlu0 %501 }
 0x1d0   :  { %3266 = vperm.xlu0 %3683, %v2619_v41   ;;  %v2525_v60 = vcombine.low %v1219_v43, %v1223_v52  ;;  %v2532_v61 = vrot.slane %v2522_v53, %v3951_v54  ;;  %v779_v62 = vrot.slane %v505_v23, %v3927_v44  ;;  %v783_v63 = vrot.slane %v505_v23, %v3930_v45 }
 0x1d1   :  { %v1785_v0 = vrot.slane %v1771_v55, %v3951_v54  ;;  %v2539_v1 = vrot.slane %v2523_v57, %v3951_v54  ;;  %v2546_v2 = vrot.slane %v2524_v58, %v3951_v54  ;;  %v787_v3 = vrot.slane %v505_v23, %v3933_v46  ;;  %v559_v57 = vpop.xlane.xlu1 %558 }
 0x1d2   :  { %v2553_v4 = vrot.slane %v2525_v60, %v3951_v54  ;;  %v791_v5 = vrot.slane %v505_v23, %v3936_v47  ;;  %v795_v6 = vrot.slane %v505_v23, %v3939_v48  ;;  %v799_v7 = vrot.slane %v505_v23, %v3942_v49 }
 0x1d3   :  { %v1786_v8 = vcombine.low %v1778_v56, %v1785_v0  ;;  %v2554_v9 = vcombine.low %v2532_v61, %v2539_v1  ;;  %v803_v10 = vrot.slane %v505_v23, %v3945_v50  ;;  %v807_v11 = vrot.slane %v505_v23, %v3948_v51 }
 0x1d4   :  { %v2555_v12 = vcombine.low %v2546_v2, %v2553_v4  ;;  %v1885_v13 = vcombine.low %v779_v62, %v783_v63  ;;  %v1886_v14 = vcombine.low %v787_v3, %v791_v5  ;;  %v1887_v15 = vcombine.low %v795_v6, %v799_v7  ;;  %v550_v6 = vpop.xlane.xlu0 %549 }
 0x1d5   :  { %3215 = vperm.xlu1 %3682, %v1786_v8   ;;  %v2562_v16 = vrot.slane %v2554_v9, %v3951_v54  ;;  %v1888_v17 = vcombine.low %v803_v10, %v807_v11  ;;  %v1291_v18 = vrot.slane %v553_v59, %v3927_v44  ;;  %v1295_v19 = vrot.slane %v553_v59, %v3930_v45 }
 0x1d6   :  { %v2569_v21 = vrot.slane %v2555_v12, %v3951_v54  ;;  %v1895_v22 = vrot.slane %v1885_v13, %v3951_v54  ;;  %v1902_v23 = vrot.slane %v1886_v14, %v3951_v54  ;;  %v1909_v24 = vrot.slane %v1887_v15, %v3951_v54 }
 0x1d7   :  { %v1916_v25 = vrot.slane %v1888_v17, %v3951_v54  ;;  %v1299_v26 = vrot.slane %v553_v59, %v3933_v46  ;;  %v1303_v27 = vrot.slane %v553_v59, %v3936_v47  ;;  %v1307_v28 = vrot.slane %v553_v59, %v3939_v48 }
 0x1d8   :  { %v2570_v29 = vcombine.low %v2562_v16, %v2569_v21  ;;  %v1917_v30 = vcombine.low %v1895_v22, %v1902_v23  ;;  %v1311_v31 = vrot.slane %v553_v59, %v3942_v49  ;;  %v1315_v32 = vrot.slane %v553_v59, %v3945_v50 }
 0x1d9   :  { %v1918_v34 = vcombine.low %v1909_v24, %v1916_v25  ;;  %v1319_v35 = vrot.slane %v553_v59, %v3948_v51  ;;  %v2669_v36 = vcombine.low %v1291_v18, %v1295_v19  ;;  %v2670_v37 = vcombine.low %v1299_v26, %v1303_v27 }
 0x1da   :  { %3263 = vperm.xlu1 %3682, %v2570_v29   ;;  %v1925_v38 = vrot.slane %v1917_v30, %v3951_v54  ;;  %v2671_v40 = vcombine.low %v1307_v28, %v1311_v31  ;;  %v747_v41 = vrot.slane %v502_v33, %v3927_v44  ;;  %v751_v43 = vrot.slane %v502_v33, %v3930_v45 }
 0x1db   :  { %v1932_v52 = vrot.slane %v1918_v34, %v3951_v54  ;;  %v2672_v53 = vcombine.low %v1315_v32, %v1319_v35  ;;  %v2679_v55 = vrot.slane %v2669_v36, %v3951_v54  ;;  %v2686_v56 = vrot.slane %v2670_v37, %v3951_v54  ;;  %v4116_v32 = vpop.xlane.xlu0 %507  ;;  %v4121_v37 = vpop.xlane.xlu1 %516 }
 0x1dc   :  { %v2693_v58 = vrot.slane %v2671_v40, %v3951_v54  ;;  %v755_v59 = vrot.slane %v502_v33, %v3933_v46  ;;  %v759_v60 = vrot.slane %v502_v33, %v3936_v47  ;;  %v763_v61 = vrot.slane %v502_v33, %v3939_v48 }
 0x1dd   :  { %v1933_v62 = vcombine.low %v1925_v38, %v1932_v52  ;;  %v2700_v63 = vrot.slane %v2672_v53, %v3951_v54  ;;  %v2701_v0 = vcombine.low %v2679_v55, %v2686_v56  ;;  %v767_v1 = vrot.slane %v502_v33, %v3942_v49 }
 0x1de   :  { %v771_v2 = vrot.slane %v502_v33, %v3945_v50  ;;  %v775_v3 = vrot.slane %v502_v33, %v3948_v51  ;;  %v1836_v4 = vcombine.low %v747_v41, %v751_v43  ;;  %v1837_v5 = vcombine.low %v755_v59, %v759_v60 }
 0x1df   :  { %3224 = vperm.xlu1 %3682, %v1933_v62   ;;  %v2702_v7 = vcombine.low %v2693_v58, %v2700_v63  ;;  %v2709_v8 = vrot.slane %v2701_v0, %v3951_v54  ;;  %v1838_v9 = vcombine.low %v763_v61, %v767_v1  ;;  %v1355_v10 = vrot.slane %v559_v57, %v3927_v44 }
 0x1e0   :  { %v1839_v11 = vcombine.low %v771_v2, %v775_v3  ;;  %v1846_v12 = vrot.slane %v1836_v4, %v3951_v54  ;;  %v1853_v13 = vrot.slane %v1837_v5, %v3951_v54  ;;  %v1359_v14 = vrot.slane %v559_v57, %v3930_v45  ;;  %v4138_v5 = vpop.xlane.xlu0 %555 }
 0x1e1   :  { %v2716_v15 = vrot.slane %v2702_v7, %v3951_v54  ;;  %v1860_v16 = vrot.slane %v1838_v9, %v3951_v54  ;;  %v1363_v17 = vrot.slane %v559_v57, %v3933_v46  ;;  %v1367_v18 = vrot.slane %v559_v57, %v3936_v47 }
 0x1e2   :  { %v1867_v19 = vrot.slane %v1839_v11, %v3951_v54  ;;  %v1868_v21 = vcombine.low %v1846_v12, %v1853_v13  ;;  %v1371_v22 = vrot.slane %v559_v57, %v3939_v48  ;;  %v1375_v23 = vrot.slane %v559_v57, %v3942_v49 }
 0x1e3   :  { %v2717_v24 = vcombine.low %v2709_v8, %v2716_v15  ;;  %v1379_v25 = vrot.slane %v559_v57, %v3945_v50  ;;  %v1383_v26 = vrot.slane %v559_v57, %v3948_v51  ;;  %v2767_v27 = vcombine.low %v1355_v10, %v1359_v14  ;;  %v565_v10 = vpop.xlane.xlu1 %564 }
 0x1e4   :  { %v1869_v28 = vcombine.low %v1860_v16, %v1867_v19  ;;  %v1876_v29 = vrot.slane %v1868_v21, %v3951_v54  ;;  %v2768_v30 = vcombine.low %v1363_v17, %v1367_v18  ;;  %v2769_v31 = vcombine.low %v1371_v22, %v1375_v23 }
 0x1e5   :  { %3272 = vperm.xlu0 %3683, %v2717_v24   ;;  %v2770_v33 = vcombine.low %v1379_v25, %v1383_v26  ;;  %v2777_v34 = vrot.slane %v2767_v27, %v3951_v54  ;;  %v1259_v35 = vrot.slane %v550_v6, %v3927_v44  ;;  %v1263_v36 = vrot.slane %v550_v6, %v3930_v45 }
 0x1e6   :  { %v1883_v38 = vrot.slane %v1869_v28, %v3951_v54  ;;  %v2784_v40 = vrot.slane %v2768_v30, %v3951_v54  ;;  %v2791_v41 = vrot.slane %v2769_v31, %v3951_v54  ;;  %v1267_v43 = vrot.slane %v550_v6, %v3933_v46 }
 0x1e7   :  { %v2798_v52 = vrot.slane %v2770_v33, %v3951_v54  ;;  %v1271_v53 = vrot.slane %v550_v6, %v3936_v47  ;;  %v1275_v55 = vrot.slane %v550_v6, %v3939_v48  ;;  %v1279_v56 = vrot.slane %v550_v6, %v3942_v49  ;;  %v4163_v33 = vpop.xlane.xlu0 %513 }
 0x1e8   :  { %v1884_v57 = vcombine.low %v1876_v29, %v1883_v38  ;;  %v2799_v58 = vcombine.low %v2777_v34, %v2784_v40  ;;  %v1283_v59 = vrot.slane %v550_v6, %v3945_v50  ;;  %v1287_v60 = vrot.slane %v550_v6, %v3948_v51 }
 0x1e9   :  { %v2800_v61 = vcombine.low %v2791_v41, %v2798_v52  ;;  %v2620_v62 = vcombine.low %v1259_v35, %v1263_v36  ;;  %v2621_v63 = vcombine.low %v1267_v43, %v1271_v53  ;;  %v2622_v0 = vcombine.low %v1275_v55, %v1279_v56 }
 0x1ea   :  { %3221 = vperm.xlu1 %3682, %v1884_v57   ;;  %v2807_v1 = vrot.slane %v2799_v58, %v3951_v54  ;;  %v2623_v2 = vcombine.low %v1283_v59, %v1287_v60  ;;  %v843_v3 = vrot.slane %v4074_v20, %v3927_v44  ;;  %v847_v4 = vrot.slane %v4074_v20, %v3930_v45 }
 0x1eb   :  { %v2814_v7 = vrot.slane %v2800_v61, %v3951_v54  ;;  %v2630_v6 = vrot.slane %v2620_v62, %v3951_v54  ;;  %v2637_v8 = vrot.slane %v2621_v63, %v3951_v54  ;;  %v2644_v9 = vrot.slane %v2622_v0, %v3951_v54 }
 0x1ec   :  { %v2651_v11 = vrot.slane %v2623_v2, %v3951_v54  ;;  %v851_v12 = vrot.slane %v4074_v20, %v3933_v46  ;;  %v855_v13 = vrot.slane %v4074_v20, %v3936_v47  ;;  %v859_v14 = vrot.slane %v4074_v20, %v3939_v48 }
 0x1ed   :  { %v2815_v15 = vcombine.low %v2807_v1, %v2814_v7  ;;  %v2652_v16 = vcombine.low %v2630_v6, %v2637_v8  ;;  %v863_v17 = vrot.slane %v4074_v20, %v3942_v49  ;;  %v867_v18 = vrot.slane %v4074_v20, %v3945_v50  ;;  %v562_v7 = vpop.xlane.xlu0 %561 }
 0x1ee   :  { %v2653_v19 = vcombine.low %v2644_v9, %v2651_v11  ;;  %v871_v21 = vrot.slane %v4074_v20, %v3948_v51  ;;  %v1983_v22 = vcombine.low %v843_v3, %v847_v4  ;;  %v1984_v23 = vcombine.low %v851_v12, %v855_v13 }
 0x1ef   :  { %3278 = vperm.xlu0 %3683, %v2815_v15   ;;  %v2660_v24 = vrot.slane %v2652_v16, %v3951_v54  ;;  %v1985_v25 = vcombine.low %v859_v14, %v863_v17  ;;  %v1419_v26 = vrot.slane %v565_v10, %v3927_v44  ;;  %v1423_v27 = vrot.slane %v565_v10, %v3930_v45 }
 0x1f0   :  { %v2667_v28 = vrot.slane %v2653_v19, %v3951_v54  ;;  %v1986_v29 = vcombine.low %v867_v18, %v871_v21  ;;  %v1993_v30 = vrot.slane %v1983_v22, %v3951_v54  ;;  %v2000_v31 = vrot.slane %v1984_v23, %v3951_v54 }
 0x1f1   :  { %v2007_v20 = vrot.slane %v1985_v25, %v3951_v54  ;;  %v1427_v34 = vrot.slane %v565_v10, %v3933_v46  ;;  %v1431_v35 = vrot.slane %v565_v10, %v3936_v47  ;;  %v1435_v36 = vrot.slane %v565_v10, %v3939_v48 }
 0x1f2   :  { %v2668_v38 = vcombine.low %v2660_v24, %v2667_v28  ;;  %v2014_v40 = vrot.slane %v1986_v29, %v3951_v54  ;;  %v2015_v41 = vcombine.low %v1993_v30, %v2000_v31  ;;  %v1439_v43 = vrot.slane %v565_v10, %v3942_v49  ;;  %v4199_v24 = vpop.xlane.xlu1 %522 }
 0x1f3   :  { %v1443_v52 = vrot.slane %v565_v10, %v3945_v50  ;;  %v1447_v53 = vrot.slane %v565_v10, %v3948_v51  ;;  %v2865_v55 = vcombine.low %v1419_v26, %v1423_v27  ;;  %v2866_v56 = vcombine.low %v1427_v34, %v1431_v35 }
 0x1f4   :  { %3269 = vperm.xlu1 %3682, %v2668_v38   ;;  %v2016_v57 = vcombine.low %v2007_v20, %v2014_v40  ;;  %v2023_v58 = vrot.slane %v2015_v41, %v3951_v54  ;;  %v2867_v59 = vcombine.low %v1435_v36, %v1439_v43  ;;  %v811_v60 = vrot.slane %v4116_v32, %v3927_v44 }
 0x1f5   :  { %v2868_v61 = vcombine.low %v1443_v52, %v1447_v53  ;;  %v2875_v62 = vrot.slane %v2865_v55, %v3951_v54  ;;  %v2882_v63 = vrot.slane %v2866_v56, %v3951_v54  ;;  %v815_v0 = vrot.slane %v4116_v32, %v3930_v45 }
 0x1f6   :  { %v2030_v1 = vrot.slane %v2016_v57, %v3951_v54  ;;  %v2889_v2 = vrot.slane %v2867_v59, %v3951_v54  ;;  %v819_v3 = vrot.slane %v4116_v32, %v3933_v46  ;;  %v823_v4 = vrot.slane %v4116_v32, %v3936_v47 }
 0x1f7   :  { %v2896_v6 = vrot.slane %v2868_v61, %v3951_v54  ;;  %v2897_v8 = vcombine.low %v2875_v62, %v2882_v63  ;;  %v827_v9 = vrot.slane %v4116_v32, %v3939_v48  ;;  %v831_v10 = vrot.slane %v4116_v32, %v3942_v49  ;;  %v571_v61 = vpop.xlane.xlu1 %570 }
 0x1f8   :  { %v2031_v11 = vcombine.low %v2023_v58, %v2030_v1  ;;  %v835_v12 = vrot.slane %v4116_v32, %v3945_v50  ;;  %v839_v13 = vrot.slane %v4116_v32, %v3948_v51  ;;  %v1934_v14 = vcombine.low %v811_v60, %v815_v0 }
 0x1f9   :  { %v2898_v15 = vcombine.low %v2889_v2, %v2896_v6  ;;  %v2905_v16 = vrot.slane %v2897_v8, %v3951_v54  ;;  %v1935_v17 = vcombine.low %v819_v3, %v823_v4  ;;  %v1936_v18 = vcombine.low %v827_v9, %v831_v10 }
 0x1fa   :  { %3230 = vperm.xlu1 %3682, %v2031_v11   ;;  %v1937_v19 = vcombine.low %v835_v12, %v839_v13  ;;  %v1944_v21 = vrot.slane %v1934_v14, %v3951_v54  ;;  %v1387_v22 = vrot.slane %v562_v7, %v3927_v44  ;;  %v1391_v23 = vrot.slane %v562_v7, %v3930_v45 }
 0x1fb   :  { %v2912_v25 = vrot.slane %v2898_v15, %v3951_v54  ;;  %v1951_v32 = vrot.slane %v1935_v17, %v3951_v54  ;;  %v1958_v26 = vrot.slane %v1936_v18, %v3951_v54  ;;  %v1395_v27 = vrot.slane %v562_v7, %v3933_v46 }
 0x1fc   :  { %v1965_v28 = vrot.slane %v1937_v19, %v3951_v54  ;;  %v1399_v29 = vrot.slane %v562_v7, %v3936_v47  ;;  %v1403_v30 = vrot.slane %v562_v7, %v3939_v48  ;;  %v1407_v31 = vrot.slane %v562_v7, %v3942_v49  ;;  %v4239_v19 = vpop.xlane.xlu0 %519 }
 0x1fd   :  { %v2913_v20 = vcombine.low %v2905_v16, %v2912_v25  ;;  %v1966_v34 = vcombine.low %v1944_v21, %v1951_v32  ;;  %v1411_v35 = vrot.slane %v562_v7, %v3945_v50  ;;  %v1415_v36 = vrot.slane %v562_v7, %v3948_v51 }
 0x1fe   :  { %v1967_v38 = vcombine.low %v1958_v26, %v1965_v28  ;;  %v2816_v40 = vcombine.low %v1387_v22, %v1391_v23  ;;  %v2817_v41 = vcombine.low %v1395_v27, %v1399_v29  ;;  %v2818_v43 = vcombine.low %v1403_v30, %v1407_v31 }
 0x1ff   :  { %3284 = vperm.xlu0 %3683, %v2913_v20   ;;  %v1974_v52 = vrot.slane %v1966_v34, %v3951_v54  ;;  %v2819_v53 = vcombine.low %v1411_v35, %v1415_v36  ;;  %v1323_v55 = vrot.slane %v4138_v5, %v3927_v44  ;;  %v1327_v56 = vrot.slane %v4138_v5, %v3930_v45 }
 0x200   :  { %v1981_v57 = vrot.slane %v1967_v38, %v3951_v54  ;;  %v2826_v58 = vrot.slane %v2816_v40, %v3951_v54  ;;  %v2833_v59 = vrot.slane %v2817_v41, %v3951_v54  ;;  %v2840_v60 = vrot.slane %v2818_v43, %v3951_v54 }
 0x201   :  { %v2847_v62 = vrot.slane %v2819_v53, %v3951_v54  ;;  %v1331_v63 = vrot.slane %v4138_v5, %v3933_v46  ;;  %v1335_v0 = vrot.slane %v4138_v5, %v3936_v47  ;;  %v1339_v1 = vrot.slane %v4138_v5, %v3939_v48 }
 0x202   :  { %v1982_v2 = vcombine.low %v1974_v52, %v1981_v57  ;;  %v2848_v3 = vcombine.low %v2826_v58, %v2833_v59  ;;  %v1343_v4 = vrot.slane %v4138_v5, %v3942_v49  ;;  %v1347_v7 = vrot.slane %v4138_v5, %v3945_v50  ;;  %v568_v57 = vpop.xlane.xlu0 %567 }
 0x203   :  { %v2849_v6 = vcombine.low %v2840_v60, %v2847_v62  ;;  %v1351_v8 = vrot.slane %v4138_v5, %v3948_v51  ;;  %v2718_v9 = vcombine.low %v1323_v55, %v1327_v56  ;;  %v2719_v10 = vcombine.low %v1331_v63, %v1335_v0 }
 0x204   :  { %3227 = vperm.xlu1 %3682, %v1982_v2   ;;  %v2856_v11 = vrot.slane %v2848_v3, %v3951_v54  ;;  %v2720_v12 = vcombine.low %v1339_v1, %v1343_v4  ;;  %v1483_v13 = vrot.slane %v571_v61, %v3927_v44  ;;  %v1487_v14 = vrot.slane %v571_v61, %v3930_v45 }
 0x205   :  { %v2863_v15 = vrot.slane %v2849_v6, %v3951_v54  ;;  %v2721_v16 = vcombine.low %v1347_v7, %v1351_v8  ;;  %v2728_v17 = vrot.slane %v2718_v9, %v3951_v54  ;;  %v2735_v18 = vrot.slane %v2719_v10, %v3951_v54 }
 0x206   :  { %v2742_v5 = vrot.slane %v2720_v12, %v3951_v54  ;;  %v1491_v21 = vrot.slane %v571_v61, %v3933_v46  ;;  %v1495_v22 = vrot.slane %v571_v61, %v3936_v47  ;;  %v1499_v23 = vrot.slane %v571_v61, %v3939_v48 }
 0x207   :  { %v2864_v25 = vcombine.low %v2856_v11, %v2863_v15  ;;  %v2749_v32 = vrot.slane %v2721_v16, %v3951_v54  ;;  %v2750_v26 = vcombine.low %v2728_v17, %v2735_v18  ;;  %v1503_v27 = vrot.slane %v571_v61, %v3942_v49  ;;  %v4275_v11 = vpop.xlane.xlu1 %528 }
 0x208   :  { %v1507_v28 = vrot.slane %v571_v61, %v3945_v50  ;;  %v1511_v29 = vrot.slane %v571_v61, %v3948_v51  ;;  %v2963_v30 = vcombine.low %v1483_v13, %v1487_v14  ;;  %v2964_v31 = vcombine.low %v1491_v21, %v1495_v22 }
 0x209   :  { %3281 = vperm.xlu0 %3683, %v2864_v25   ;;  %v2751_v20 = vcombine.low %v2742_v5, %v2749_v32  ;;  %v2758_v34 = vrot.slane %v2750_v26, %v3951_v54  ;;  %v2965_v35 = vcombine.low %v1499_v23, %v1503_v27  ;;  %v907_v36 = vrot.slane %v4121_v37, %v3927_v44 }
 0x20a   :  { %v2966_v38 = vcombine.low %v1507_v28, %v1511_v29  ;;  %v2973_v40 = vrot.slane %v2963_v30, %v3951_v54  ;;  %v2980_v41 = vrot.slane %v2964_v31, %v3951_v54  ;;  %v911_v43 = vrot.slane %v4121_v37, %v3930_v45 }
 0x20b   :  { %v2765_v52 = vrot.slane %v2751_v20, %v3951_v54  ;;  %v2987_v53 = vrot.slane %v2965_v35, %v3951_v54  ;;  %v915_v55 = vrot.slane %v4121_v37, %v3933_v46  ;;  %v919_v56 = vrot.slane %v4121_v37, %v3936_v47 }
 0x20c   :  { %v2994_v58 = vrot.slane %v2966_v38, %v3951_v54  ;;  %v2995_v59 = vcombine.low %v2973_v40, %v2980_v41  ;;  %v923_v60 = vrot.slane %v4121_v37, %v3939_v48  ;;  %v927_v61 = vrot.slane %v4121_v37, %v3942_v49  ;;  %v577_v38 = vpop.xlane.xlu1 %576 }
 0x20d   :  { %v2766_v62 = vcombine.low %v2758_v34, %v2765_v52  ;;  %v931_v63 = vrot.slane %v4121_v37, %v3945_v50  ;;  %v935_v0 = vrot.slane %v4121_v37, %v3948_v51  ;;  %v2081_v1 = vcombine.low %v907_v36, %v911_v43 }
 0x20e   :  { %v2996_v2 = vcombine.low %v2987_v53, %v2994_v58  ;;  %v3003_v3 = vrot.slane %v2995_v59, %v3951_v54  ;;  %v2082_v4 = vcombine.low %v915_v55, %v919_v56  ;;  %v2083_v7 = vcombine.low %v923_v60, %v927_v61 }
 0x20f   :  { %3275 = vperm.xlu1 %3682, %v2766_v62   ;;  %v2084_v6 = vcombine.low %v931_v63, %v935_v0  ;;  %v2091_v8 = vrot.slane %v2081_v1, %v3951_v54  ;;  %v1451_v9 = vrot.slane %v568_v57, %v3927_v44  ;;  %v1455_v10 = vrot.slane %v568_v57, %v3930_v45 }
 0x210   :  { %v3010_v12 = vrot.slane %v2996_v2, %v3951_v54  ;;  %v2098_v37 = vrot.slane %v2082_v4, %v3951_v54  ;;  %v2105_v13 = vrot.slane %v2083_v7, %v3951_v54  ;;  %v1459_v14 = vrot.slane %v568_v57, %v3933_v46 }
 0x211   :  { %v2112_v15 = vrot.slane %v2084_v6, %v3951_v54  ;;  %v1463_v16 = vrot.slane %v568_v57, %v3936_v47  ;;  %v1467_v17 = vrot.slane %v568_v57, %v3939_v48  ;;  %v1471_v18 = vrot.slane %v568_v57, %v3942_v49  ;;  %v4315_v6 = vpop.xlane.xlu0 %525 }
 0x212   :  { %v3011_v5 = vcombine.low %v3003_v3, %v3010_v12  ;;  %v2113_v21 = vcombine.low %v2091_v8, %v2098_v37  ;;  %v1475_v22 = vrot.slane %v568_v57, %v3945_v50  ;;  %v1479_v23 = vrot.slane %v568_v57, %v3948_v51 }
 0x213   :  { %v2114_v25 = vcombine.low %v2105_v13, %v2112_v15  ;;  %v2914_v32 = vcombine.low %v1451_v9, %v1455_v10  ;;  %v2915_v26 = vcombine.low %v1459_v14, %v1463_v16  ;;  %v2916_v27 = vcombine.low %v1467_v17, %v1471_v18 }
 0x214   :  { %3290 = vperm.xlu0 %3683, %v3011_v5   ;;  %v2121_v28 = vrot.slane %v2113_v21, %v3951_v54  ;;  %v2917_v29 = vcombine.low %v1475_v22, %v1479_v23  ;;  %v875_v30 = vrot.slane %v4163_v33, %v3927_v44  ;;  %v879_v31 = vrot.slane %v4163_v33, %v3930_v45 }
 0x215   :  { %v2128_v20 = vrot.slane %v2114_v25, %v3951_v54  ;;  %v2924_v34 = vrot.slane %v2914_v32, %v3951_v54  ;;  %v2931_v35 = vrot.slane %v2915_v26, %v3951_v54  ;;  %v2938_v36 = vrot.slane %v2916_v27, %v3951_v54 }
 0x216   :  { %v2945_v40 = vrot.slane %v2917_v29, %v3951_v54  ;;  %v883_v41 = vrot.slane %v4163_v33, %v3933_v46  ;;  %v887_v43 = vrot.slane %v4163_v33, %v3936_v47  ;;  %v891_v52 = vrot.slane %v4163_v33, %v3939_v48 }
 0x217   :  { %v2129_v53 = vcombine.low %v2121_v28, %v2128_v20  ;;  %v2946_v55 = vcombine.low %v2924_v34, %v2931_v35  ;;  %v895_v56 = vrot.slane %v4163_v33, %v3942_v49  ;;  %v899_v57 = vrot.slane %v4163_v33, %v3945_v50  ;;  %v574_v20 = vpop.xlane.xlu0 %573 }
 0x218   :  { %v2947_v58 = vcombine.low %v2938_v36, %v2945_v40  ;;  %v903_v59 = vrot.slane %v4163_v33, %v3948_v51  ;;  %v2032_v60 = vcombine.low %v875_v30, %v879_v31  ;;  %v2033_v61 = vcombine.low %v883_v41, %v887_v43 }
 0x219   :  { %3236 = vperm.xlu1 %3682, %v2129_v53   ;;  %v2954_v62 = vrot.slane %v2946_v55, %v3951_v54  ;;  %v2034_v63 = vcombine.low %v891_v52, %v895_v56  ;;  %v1547_v0 = vrot.slane %v577_v38, %v3927_v44  ;;  %v1551_v1 = vrot.slane %v577_v38, %v3930_v45 }
 0x21a   :  { %v2961_v2 = vrot.slane %v2947_v58, %v3951_v54  ;;  %v2035_v3 = vcombine.low %v899_v57, %v903_v59  ;;  %v2042_v4 = vrot.slane %v2032_v60, %v3951_v54  ;;  %v2049_v7 = vrot.slane %v2033_v61, %v3951_v54 }
 0x21b   :  { %v2056_v33 = vrot.slane %v2034_v63, %v3951_v54  ;;  %v1555_v8 = vrot.slane %v577_v38, %v3933_v46  ;;  %v1559_v9 = vrot.slane %v577_v38, %v3936_v47  ;;  %v1563_v10 = vrot.slane %v577_v38, %v3939_v48 }
 0x21c   :  { %v2962_v12 = vcombine.low %v2954_v62, %v2961_v2  ;;  %v2063_v37 = vrot.slane %v2035_v3, %v3951_v54  ;;  %v2064_v13 = vcombine.low %v2042_v4, %v2049_v7  ;;  %v1567_v14 = vrot.slane %v577_v38, %v3942_v49  ;;  %v4351_v62 = vpop.xlane.xlu1 %582 }
 0x21d   :  { %v1571_v15 = vrot.slane %v577_v38, %v3945_v50  ;;  %v1575_v16 = vrot.slane %v577_v38, %v3948_v51  ;;  %v3061_v17 = vcombine.low %v1547_v0, %v1551_v1  ;;  %v3062_v18 = vcombine.low %v1555_v8, %v1559_v9 }
 0x21e   :  { %3287 = vperm.xlu0 %3683, %v2962_v12   ;;  %v2065_v5 = vcombine.low %v2056_v33, %v2063_v37  ;;  %v2072_v21 = vrot.slane %v2064_v13, %v3951_v54  ;;  %v3063_v22 = vcombine.low %v1563_v10, %v1567_v14  ;;  %v971_v23 = vrot.slane %v4199_v24, %v3927_v44 }
 0x21f   :  { %v3064_v25 = vcombine.low %v1571_v15, %v1575_v16  ;;  %v3071_v32 = vrot.slane %v3061_v17, %v3951_v54  ;;  %v3078_v26 = vrot.slane %v3062_v18, %v3951_v54  ;;  %v975_v27 = vrot.slane %v4199_v24, %v3930_v45 }
 0x220   :  { %v2079_v28 = vrot.slane %v2065_v5, %v3951_v54  ;;  %v3085_v29 = vrot.slane %v3063_v22, %v3951_v54  ;;  %v979_v30 = vrot.slane %v4199_v24, %v3933_v46  ;;  %v983_v31 = vrot.slane %v4199_v24, %v3936_v47 }
 0x221   :  { %v3092_v34 = vrot.slane %v3064_v25, %v3951_v54  ;;  %v3093_v35 = vcombine.low %v3071_v32, %v3078_v26  ;;  %v987_v36 = vrot.slane %v4199_v24, %v3939_v48  ;;  %v991_v38 = vrot.slane %v4199_v24, %v3942_v49  ;;  %v580_v25 = vpop.xlane.xlu1 %579 }
 0x222   :  { %v2080_v40 = vcombine.low %v2072_v21, %v2079_v28  ;;  %v995_v41 = vrot.slane %v4199_v24, %v3945_v50  ;;  %v999_v43 = vrot.slane %v4199_v24, %v3948_v51  ;;  %v2179_v52 = vcombine.low %v971_v23, %v975_v27 }
 0x223   :  { %v3094_v53 = vcombine.low %v3085_v29, %v3092_v34  ;;  %v3101_v55 = vrot.slane %v3093_v35, %v3951_v54  ;;  %v2180_v56 = vcombine.low %v979_v30, %v983_v31  ;;  %v2181_v57 = vcombine.low %v987_v36, %v991_v38 }
 0x224   :  { %3233 = vperm.xlu1 %3682, %v2080_v40   ;;  %v2182_v58 = vcombine.low %v995_v41, %v999_v43  ;;  %v2189_v59 = vrot.slane %v2179_v52, %v3951_v54  ;;  %v1515_v60 = vrot.slane %v574_v20, %v3927_v44  ;;  %v1519_v61 = vrot.slane %v574_v20, %v3930_v45 }
 0x225   :  { %v3108_v63 = vrot.slane %v3094_v53, %v3951_v54  ;;  %v2196_v24 = vrot.slane %v2180_v56, %v3951_v54  ;;  %v2203_v0 = vrot.slane %v2181_v57, %v3951_v54  ;;  %v1523_v1 = vrot.slane %v574_v20, %v3933_v46 }
 0x226   :  { %v2210_v2 = vrot.slane %v2182_v58, %v3951_v54  ;;  %v1527_v3 = vrot.slane %v574_v20, %v3936_v47  ;;  %v1531_v4 = vrot.slane %v574_v20, %v3939_v48  ;;  %v1535_v7 = vrot.slane %v574_v20, %v3942_v49 }
 0x227   :  { %v3109_v33 = vcombine.low %v3101_v55, %v3108_v63  ;;  %v2211_v8 = vcombine.low %v2189_v59, %v2196_v24  ;;  %v1539_v9 = vrot.slane %v574_v20, %v3945_v50  ;;  %v1543_v10 = vrot.slane %v574_v20, %v3948_v51 }
 0x228   :  { %v2212_v12 = vcombine.low %v2203_v0, %v2210_v2  ;;  %v3012_v37 = vcombine.low %v1515_v60, %v1519_v61  ;;  %v3013_v13 = vcombine.low %v1523_v1, %v1527_v3  ;;  %v3014_v14 = vcombine.low %v1531_v4, %v1535_v7 }
 0x229   :  { %3296 = vperm.xlu0 %3683, %v3109_v33   ;;  %v2219_v15 = vrot.slane %v2211_v8, %v3951_v54  ;;  %v3015_v16 = vcombine.low %v1539_v9, %v1543_v10  ;;  %v939_v17 = vrot.slane %v4239_v19, %v3927_v44  ;;  %v943_v18 = vrot.slane %v4239_v19, %v3930_v45 }
 0x22a   :  { %v2226_v5 = vrot.slane %v2212_v12, %v3951_v54  ;;  %v3022_v21 = vrot.slane %v3012_v37, %v3951_v54  ;;  %v3029_v22 = vrot.slane %v3013_v13, %v3951_v54  ;;  %v3036_v23 = vrot.slane %v3014_v14, %v3951_v54 }
 0x22b   :  { %v3043_v32 = vrot.slane %v3015_v16, %v3951_v54  ;;  %v947_v26 = vrot.slane %v4239_v19, %v3933_v46  ;;  %v951_v27 = vrot.slane %v4239_v19, %v3936_v47  ;;  %v955_v28 = vrot.slane %v4239_v19, %v3939_v48 }
 0x22c   :  { %v2227_v29 = vcombine.low %v2219_v15, %v2226_v5  ;;  %v3044_v30 = vcombine.low %v3022_v21, %v3029_v22  ;;  %v959_v31 = vrot.slane %v4239_v19, %v3942_v49  ;;  %v963_v20 = vrot.slane %v4239_v19, %v3945_v50 }
 0x22d   :  { %v3045_v34 = vcombine.low %v3036_v23, %v3043_v32  ;;  %v967_v35 = vrot.slane %v4239_v19, %v3948_v51  ;;  %v2130_v36 = vcombine.low %v939_v17, %v943_v18  ;;  %v2131_v38 = vcombine.low %v947_v26, %v951_v27 }
 0x22e   :  { %3242 = vperm.xlu1 %3682, %v2227_v29   ;;  %v3052_v40 = vrot.slane %v3044_v30, %v3951_v54  ;;  %v2132_v41 = vcombine.low %v955_v28, %v959_v31  ;;  %v1579_v43 = vrot.slane %v580_v25, %v3927_v44  ;;  %v1583_v52 = vrot.slane %v580_v25, %v3930_v45 }
 0x22f   :  { %v3059_v53 = vrot.slane %v3045_v34, %v3951_v54  ;;  %v2133_v55 = vcombine.low %v963_v20, %v967_v35  ;;  %v2140_v56 = vrot.slane %v2130_v36, %v3951_v54  ;;  %v2147_v57 = vrot.slane %v2131_v38, %v3951_v54 }
 0x230   :  { %v2154_v58 = vrot.slane %v2132_v41, %v3951_v54  ;;  %v1587_v19 = vrot.slane %v580_v25, %v3933_v46  ;;  %v1591_v59 = vrot.slane %v580_v25, %v3936_v47  ;;  %v1595_v60 = vrot.slane %v580_v25, %v3939_v48 }
 0x231   :  { %v3060_v61 = vcombine.low %v3052_v40, %v3059_v53  ;;  %v2161_v63 = vrot.slane %v2133_v55, %v3951_v54  ;;  %v2162_v24 = vcombine.low %v2140_v56, %v2147_v57  ;;  %v1599_v0 = vrot.slane %v580_v25, %v3942_v49 }
 0x232   :  { %v1603_v1 = vrot.slane %v580_v25, %v3945_v50  ;;  %v1607_v2 = vrot.slane %v580_v25, %v3948_v51  ;;  %v3110_v3 = vcombine.low %v1579_v43, %v1583_v52  ;;  %v3111_v4 = vcombine.low %v1587_v19, %v1591_v59 }
 0x233   :  { %3293 = vperm.xlu0 %3683, %v3060_v61   ;;  %v2163_v7 = vcombine.low %v2154_v58, %v2161_v63  ;;  %v2170_v33 = vrot.slane %v2162_v24, %v3951_v54  ;;  %v3112_v8 = vcombine.low %v1595_v60, %v1599_v0  ;;  %v1035_v9 = vrot.slane %v4275_v11, %v3927_v44 }
 0x234   :  { %v3113_v10 = vcombine.low %v1603_v1, %v1607_v2  ;;  %v3120_v12 = vrot.slane %v3110_v3, %v3951_v54  ;;  %v3127_v37 = vrot.slane %v3111_v4, %v3951_v54  ;;  %v1039_v13 = vrot.slane %v4275_v11, %v3930_v45  ;;  %v532_v2 = vpop.xlane.xlu0 %531 }
 0x235   :  { %v2177_v14 = vrot.slane %v2163_v7, %v3951_v54  ;;  %v3134_v15 = vrot.slane %v3112_v8, %v3951_v54  ;;  %v1043_v16 = vrot.slane %v4275_v11, %v3933_v46  ;;  %v1047_v17 = vrot.slane %v4275_v11, %v3936_v47 }
 0x236   :  { %v3141_v18 = vrot.slane %v3113_v10, %v3951_v54  ;;  %v3142_v5 = vcombine.low %v3120_v12, %v3127_v37  ;;  %v1051_v21 = vrot.slane %v4275_v11, %v3939_v48  ;;  %v1055_v22 = vrot.slane %v4275_v11, %v3942_v49 }
 0x237   :  { %v2178_v23 = vcombine.low %v2170_v33, %v2177_v14  ;;  %v1059_v25 = vrot.slane %v4275_v11, %v3945_v50  ;;  %v1063_v32 = vrot.slane %v4275_v11, %v3948_v51  ;;  %v2277_v26 = vcombine.low %v1035_v9, %v1039_v13 }
 0x238   :  { %v3143_v27 = vcombine.low %v3134_v15, %v3141_v18  ;;  %v3150_v28 = vrot.slane %v3142_v5, %v3951_v54  ;;  %v2278_v29 = vcombine.low %v1043_v16, %v1047_v17  ;;  %v2279_v30 = vcombine.low %v1051_v21, %v1055_v22 }
 0x239   :  { %3239 = vperm.xlu1 %3682, %v2178_v23   ;;  %v2280_v31 = vcombine.low %v1059_v25, %v1063_v32  ;;  %v2287_v20 = vrot.slane %v2277_v26, %v3951_v54  ;;  %v1611_v34 = vrot.slane %v4351_v62, %v3927_v44  ;;  %v1615_v35 = vrot.slane %v4351_v62, %v3930_v45 }
 0x23a   :  { %v3157_v36 = vrot.slane %v3143_v27, %v3951_v54  ;;  %v2294_v11 = vrot.slane %v2278_v29, %v3951_v54  ;;  %v2301_v38 = vrot.slane %v2279_v30, %v3951_v54  ;;  %v1619_v40 = vrot.slane %v4351_v62, %v3933_v46 }
 0x23b   :  { %v2308_v41 = vrot.slane %v2280_v31, %v3951_v54  ;;  %v1623_v43 = vrot.slane %v4351_v62, %v3936_v47  ;;  %v1627_v52 = vrot.slane %v4351_v62, %v3939_v48  ;;  %v1631_v53 = vrot.slane %v4351_v62, %v3942_v49 }
 0x23c   :  { %v3158_v55 = vcombine.low %v3150_v28, %v3157_v36  ;;  %v2309_v56 = vcombine.low %v2287_v20, %v2294_v11  ;;  %v1635_v57 = vrot.slane %v4351_v62, %v3945_v50  ;;  %v1639_v58 = vrot.slane %v4351_v62, %v3948_v51  ;;  %v535_v28 = vpop.xlane.xlu0 %534 }
 0x23d   :  { %v2310_v19 = vcombine.low %v2301_v38, %v2308_v41  ;;  %v3159_v59 = vcombine.low %v1611_v34, %v1615_v35  ;;  %v3160_v60 = vcombine.low %v1619_v40, %v1623_v43  ;;  %v3161_v61 = vcombine.low %v1627_v52, %v1631_v53 }
 0x23e   :  { %3299 = vperm.xlu0 %3683, %v3158_v55   ;;  %v2317_v63 = vrot.slane %v2309_v56, %v3951_v54  ;;  %v3162_v24 = vcombine.low %v1635_v57, %v1639_v58  ;;  %v1003_v0 = vrot.slane %v4315_v6, %v3927_v44  ;;  %v1007_v1 = vrot.slane %v4315_v6, %v3930_v45 }
 0x23f   :  { %v2324_v3 = vrot.slane %v2310_v19, %v3951_v54  ;;  %v3169_v4 = vrot.slane %v3159_v59, %v3951_v54  ;;  %v3176_v62 = vrot.slane %v3160_v60, %v3951_v54  ;;  %v3183_v7 = vrot.slane %v3161_v61, %v3951_v54 }
 0x240   :  { %v3190_v33 = vrot.slane %v3162_v24, %v3951_v54  ;;  %v1011_v8 = vrot.slane %v4315_v6, %v3933_v46  ;;  %v1015_v9 = vrot.slane %v4315_v6, %v3936_v47  ;;  %v1019_v10 = vrot.slane %v4315_v6, %v3939_v48 }
 0x241   :  { %v2325_v12 = vcombine.low %v2317_v63, %v2324_v3  ;;  %v3191_v37 = vcombine.low %v3169_v4, %v3176_v62  ;;  %v1023_v13 = vrot.slane %v4315_v6, %v3942_v49  ;;  %v1027_v14 = vrot.slane %v4315_v6, %v3945_v50 }
 0x242   :  { %v3192_v15 = vcombine.low %v3183_v7, %v3190_v33  ;;  %v1031_v16 = vrot.slane %v4315_v6, %v3948_v51  ;;  %v2228_v17 = vcombine.low %v1003_v0, %v1007_v1  ;;  %v2229_v18 = vcombine.low %v1011_v8, %v1015_v9 }
 0x243   :  { %3248 = vperm.xlu1 %3682, %v2325_v12   ;;  %v3199_v5 = vrot.slane %v3191_v37, %v3951_v54  ;;  %v2230_v21 = vcombine.low %v1019_v10, %v1023_v13  ;;  %v1067_v22 = vrot.slane %v532_v2, %v3927_v44  ;;  %v1071_v23 = vrot.slane %v532_v2, %v3930_v45 }
 0x244   :  { %v3206_v25 = vrot.slane %v3192_v15, %v3951_v54  ;;  %v2231_v32 = vcombine.low %v1027_v14, %v1031_v16  ;;  %v2238_v26 = vrot.slane %v2228_v17, %v3951_v54  ;;  %v2245_v27 = vrot.slane %v2229_v18, %v3951_v54  ;;  %v3213_v17 = vpop.permute.xlu1 %3212 }
 0x245   :  { %v2252_v6 = vrot.slane %v2230_v21, %v3951_v54  ;;  %v1075_v29 = vrot.slane %v532_v2, %v3933_v46  ;;  %v1079_v30 = vrot.slane %v532_v2, %v3936_v47  ;;  %v1083_v31 = vrot.slane %v532_v2, %v3939_v48 }
 0x246   :  { %v3207_v20 = vcombine.low %v3199_v5, %v3206_v25  ;;  %v2259_v34 = vrot.slane %v2231_v32, %v3951_v54  ;;  %v2260_v35 = vcombine.low %v2238_v26, %v2245_v27  ;;  %v1087_v36 = vrot.slane %v532_v2, %v3942_v49  ;;  %v3261_v25 = vpop.permute.xlu0 %3260 }
 0x247   :  { %v1091_v11 = vrot.slane %v532_v2, %v3945_v50  ;;  %v1095_v38 = vrot.slane %v532_v2, %v3948_v51  ;;  %v2326_v40 = vcombine.low %v1067_v22, %v1071_v23  ;;  %v2327_v41 = vcombine.low %v1075_v29, %v1079_v30 }
 0x248   :  { %3302 = vperm.xlu0 %3683, %v3207_v20   ;;  %v2261_v43 = vcombine.low %v2252_v6, %v2259_v34  ;;  %v2268_v52 = vrot.slane %v2260_v35, %v3951_v54  ;;  %v2328_v53 = vcombine.low %v1083_v31, %v1087_v36  ;;  %v1099_v55 = vrot.slane %v535_v28, %v3927_v44  ;;  %v3258_v18 = vpop.permute.xlu1 %3257 }
 0x249   :  { %v2329_v56 = vcombine.low %v1091_v11, %v1095_v38  ;;  %v2336_v57 = vrot.slane %v2326_v40, %v3951_v54  ;;  %v2343_v58 = vrot.slane %v2327_v41, %v3951_v54  ;;  %v1103_v19 = vrot.slane %v535_v28, %v3930_v45 }
 0x24a   :  { %v2275_v59 = vrot.slane %v2261_v43, %v3951_v54  ;;  %v2350_v60 = vrot.slane %v2328_v53, %v3951_v54  ;;  %v1107_v61 = vrot.slane %v535_v28, %v3933_v46  ;;  %v1111_v63 = vrot.slane %v535_v28, %v3936_v47  ;;  %v3210_v26 = vpop.permute.xlu0 %3209 }
 0x24b   :  { %v2357_v24 = vrot.slane %v2329_v56, %v3951_v54  ;;  %v2358_v0 = vcombine.low %v2336_v57, %v2343_v58  ;;  %v1115_v44 = vrot.slane %v535_v28, %v3939_v48  ;;  %v1119_v1 = vrot.slane %v535_v28, %v3942_v49 }
 0x24c   :  { %v2276_v2 = vcombine.low %v2268_v52, %v2275_v59  ;;  %v1123_v3 = vrot.slane %v535_v28, %v3945_v50  ;;  %v1127_v45 = vrot.slane %v535_v28, %v3948_v51  ;;  %v2375_v4 = vcombine.low %v1099_v55, %v1103_v19  ;;  %v4508_v5 = vpop.permute.xlu1 %3218 }
 0x24d   :  { %v2359_v62 = vcombine.low %v2350_v60, %v2357_v24  ;;  %v2366_v7 = vrot.slane %v2358_v0, %v3951_v54  ;;  %v2376_v33 = vcombine.low %v1107_v61, %v1111_v63  ;;  %v2377_v46 = vcombine.low %v1115_v44, %v1119_v1 }
 0x24e   :  { %3245 = vperm.xlu1 %3682, %v2276_v2   ;;  %v2378_v47 = vcombine.low %v1123_v3, %v1127_v45  ;;  %v2385_v8 = vrot.slane %v2375_v4, %v3951_v54  ;;  %v3785_v16 = vmov 0.0   ;;  %v4527_v11 = vand.u32 127, %v60_v39 }
 0x24f   :  { %v2373_v9 = vrot.slane %v2359_v62, %v3951_v54  ;;  %v2392_v48 = vrot.slane %v2376_v33, %v3951_v54  ;;  %v2399_v49 = vrot.slane %v2377_v46, %v3951_v54  ;;  %64 = vst.msk [vmem:[#allocation2] sm:$0x3] %vm4502_vm1, %v3785_v16  ;;  %v3267_v28 = vpop.permute.xlu0 %3266 }
 0x250   :  { %v2406_v50 = vrot.slane %v2378_v47, %v3951_v54  ;;  %v3317_v38 = vadd.s32 4294967280, %v4527_v11  ;;  %v3310_v40 = vadd.s32 4294967288, %v4527_v11  ;;  %v3308_v52 = vsub.s32 %v4527_v11, %v3924_v42 }
 0x251   :  { %v2374_v10 = vcombine.low %v2366_v7, %v2373_v9  ;;  %v2407_v51 = vcombine.low %v2385_v8, %v2392_v48  ;;  %v3324_v53 = vadd.s32 4294967272, %v4527_v11  ;;  %v3331_v56 = vadd.s32 4294967264, %v4527_v11 }
 0x252   :  { %v2408_v12 = vcombine.low %v2399_v49, %v2406_v50  ;;  %v3320_v55 = vsub.s32 %v3317_v38, %v3924_v42  ;;  %v3313_v39 = vsub.s32 %v3310_v40, %v3924_v42  ;;  %v3418_v57 = vrot.slane %v3258_v18, %v3308_v52 }
 0x253   :  { %3251 = vperm.xlu1 %3682, %v2374_v10   ;;  %v2415_v37 = vrot.slane %v2407_v51, %v3951_v54  ;;  %v3327_v59 = vsub.s32 %v3324_v53, %v3924_v42  ;;  %v3309_v60 = vrot.slane %v3210_v26, %v3308_v52  ;;  %v3334_v61 = vsub.s32 %v3331_v56, %v3924_v42 }
 0x254   :  { %v2422_v13 = vrot.slane %v2408_v12, %v3951_v54  ;;  %v3216_v21 = vpop.permute.xlu1 %3215  ;;  %v3422_v19 = vrot.slane %v3261_v25, %v3313_v39  ;;  %v3345_v63 = vadd.s32 4294967248, %v4527_v11  ;;  %v3338_v2 = vadd.s32 4294967256, %v4527_v11 }
 0x255   :  { %v3321_v1 = vrot.slane %v3216_v21, %v3320_v55  ;;  %v3314_v3 = vrot.slane %v3213_v17, %v3313_v39  ;;  %v3432_v62 = vrot.slane %v3267_v28, %v3327_v59  ;;  %v3352_v7 = vadd.s32 4294967240, %v4527_v11 }
 0x256   :  { %v2423_v14 = vcombine.low %v2415_v37, %v2422_v13  ;;  %v3423_v44 = vsel %vm3315_vm2, %v3422_v19, %v3418_v57  ;;  %v3348_v46 = vsub.s32 %v3345_v63, %v3924_v42  ;;  %v3341_v8 = vsub.s32 %v3338_v2, %v3924_v42 }
 0x257   :  { %v3316_v33 = vsel %vm3315_vm2, %v3314_v3, %v3309_v60  ;;  %v3359_v50 = vadd.s32 4294967232, %v4527_v11  ;;  %v3328_v37 = vrot.slane %v4508_v5, %v3327_v59  ;;  %v3366_v16 = vadd.s32 4294967224, %v4527_v11 }
 0x258   :  { %3254 = vperm.xlu1 %3682, %v2423_v14   ;;  %v3323_v47 = vsel %vm3322_vm3, %v3321_v1, %v3316_v33  ;;  %v3355_v14 = vsub.s32 %v3352_v7, %v3924_v42  ;;  %v3373_v21 = vadd.s32 4294967216, %v4527_v11  ;;  %v3401_v59 = vadd.s32 4294967184, %v4527_v11 }
 0x259   :  { %v3264_v22 = vpop.permute.xlu1 %3263  ;;  %v3330_v17 = vsel %vm3329_vm4, %v3328_v37, %v3323_v47  ;;  %v3369_v28 = vsub.s32 %v3366_v16, %v3924_v42  ;;  %v3408_v2 = vadd.s32 4294967176, %v4527_v11 }
 0x25a   :  { %v3427_v58 = vrot.slane %v3264_v22, %v3320_v55  ;;  %v3387_v55 = vadd.s32 4294967200, %v4527_v11 }
 0x25c   :  { %v3428_v45 = vsel %vm3322_vm3, %v3427_v58, %v3423_v44 }
 0x25d   :  { %v3433_v9 = vsel %vm3329_vm4, %v3432_v62, %v3428_v45 }
 0x25e   :  { %v4510_v23 = vpop.permute.xlu1 %3224 }
 0x25f   :  { %v3342_v26 = vrot.slane %v4510_v23, %v3341_v8 }
 0x264   :  { %v3273_v29 = vpop.permute.xlu0 %3272 }
 0x265   :  { %v3442_v13 = vrot.slane %v3273_v29, %v3341_v8  ;;  %v3380_v29 = vadd.s32 4294967208, %v4527_v11 }
 0x267   :  { %v3383_v58 = vsub.s32 %v3380_v29, %v3924_v42 }
 0x269   :  { %v4512_v32 = vpop.permute.xlu1 %3221 }
 0x26a   :  { %v3335_v48 = vrot.slane %v4512_v32, %v3334_v61  ;;  %v3362_v32 = vsub.s32 %v3359_v50, %v3924_v42 }
 0x26c   :  { %v3337_v22 = vsel %vm3336_vm5, %v3335_v48, %v3330_v17 }
 0x26d   :  { %v3344_v40 = vsel %vm3343_vm6, %v3342_v26, %v3337_v22 }
 0x26e   :  { %v4518_v31 = vpop.permute.xlu0 %3278 }
 0x273   :  { %v3270_v27 = vpop.permute.xlu1 %3269 }
 0x274   :  { %v3437_v4 = vrot.slane %v3270_v27, %v3334_v61  ;;  %v3452_v27 = vrot.slane %v4518_v31, %v3355_v14 }
 0x276   :  { %v3438_v49 = vsel %vm3336_vm5, %v3437_v4, %v3433_v9 }
 0x277   :  { %v3443_v18 = vsel %vm3343_vm6, %v3442_v13, %v3438_v49 }
 0x279   :  { %v4514_v6 = vpop.permute.xlu1 %3230 }
 0x27a   :  { %v3356_v56 = vrot.slane %v4514_v6, %v3355_v14 }
 0x27e   :  { %v4520_v20 = vpop.permute.xlu0 %3284 }
 0x27f   :  { %v3462_v57 = vrot.slane %v4520_v20, %v3369_v28  ;;  %v3394_v20 = vadd.s32 4294967192, %v4527_v11  ;;  %v3411_v11 = vsub.s32 %v3408_v2, %v3924_v42 }
 0x281   :  { %v3397_v33 = vsub.s32 %v3394_v20, %v3924_v42 }
 0x283   :  { %v4516_v30 = vpop.permute.xlu1 %3227 }
 0x284   :  { %v3349_v25 = vrot.slane %v4516_v30, %v3348_v46  ;;  %v3376_v30 = vsub.s32 %v3373_v21, %v3924_v42 }
 0x286   :  { %v3351_v53 = vsel %vm3350_vm7, %v3349_v25, %v3344_v40 }
 0x287   :  { %v3358_v19 = vsel %vm3357_vm8, %v3356_v56, %v3351_v53 }
 0x288   :  { %v4522_v35 = vpop.permute.xlu0 %3281 }
 0x289   :  { %v3457_v23 = vrot.slane %v4522_v35, %v3362_v32 }
 0x28e   :  { %v3276_v34 = vpop.permute.xlu1 %3275 }
 0x28f   :  { %v3447_v10 = vrot.slane %v3276_v34, %v3348_v46 }
 0x291   :  { %v3448_v5 = vsel %vm3350_vm7, %v3447_v10, %v3443_v18 }
 0x292   :  { %v3453_v52 = vsel %vm3357_vm8, %v3452_v27, %v3448_v5  ;;  %v487_v5 = vld [vmem:[#allocation2] sm:$0x3] }
 0x293   :  { %v4531_v41 = vpop.permute.xlu0 %3290  ;;  %v3458_v39 = vsel %vm3364_vm9, %v3457_v23, %v3453_v52 }
 0x294   :  { %v3463_v1 = vsel %vm3371_vm10, %v3462_v57, %v3458_v39 }
 0x298   :  { %v4524_v36 = vpop.permute.xlu1 %3236 }
 0x299   :  { %v3370_v6 = vrot.slane %v4524_v36, %v3369_v28  ;;  %v3472_v36 = vrot.slane %v4531_v41, %v3383_v58 }
 0x29d   :  { %v4544_v24 = vpop.permute.xlu0 %3287 }
 0x29e   :  { %v3467_v60 = vrot.slane %v4544_v24, %v3376_v30  ;;  %v3404_v24 = vsub.s32 %v3401_v59, %v3924_v42 }
 0x2a0   :  { %v3468_v45 = vsel %vm3378_vm11, %v3467_v60, %v3463_v1 }
 0x2a1   :  { %v3473_v9 = vsel %vm3385_vm12, %v3472_v36, %v3468_v45 }
 0x2a3   :  { %v4533_v43 = vpop.permute.xlu1 %3233 }
 0x2a4   :  { %v3363_v31 = vrot.slane %v4533_v43, %v3362_v32  ;;  %v3390_v43 = vsub.s32 %v3387_v55, %v3924_v42 }
 0x2a6   :  { %v3365_v35 = vsel %vm3364_vm9, %v3363_v31, %v3358_v19 }
 0x2a7   :  { %v3372_v3 = vsel %vm3371_vm10, %v3370_v6, %v3365_v35 }
 0x2a8   :  { %v4556_v51 = vpop.permute.xlu0 %3296 }
 0x2a9   :  { %v3482_v41 = vrot.slane %v4556_v51, %v3397_v33 }
 0x2ad   :  { %v4546_v0 = vpop.permute.xlu1 %3242 }
 0x2ae   :  { %v3384_v46 = vrot.slane %v4546_v0, %v3383_v58 }
 0x2b2   :  { %v3294_v34 = vpop.permute.xlu0 %3293 }
 0x2b3   :  { %v3477_v4 = vrot.slane %v3294_v34, %v3390_v43 }
 0x2b5   :  { %v3478_v49 = vsel %vm3392_vm13, %v3477_v4, %v3473_v9 }
 0x2b6   :  { %v3483_v13 = vsel %vm3399_vm14, %v3482_v41, %v3478_v49 }
 0x2b8   :  { %v3240_v12 = vpop.permute.xlu1 %3239 }
 0x2b9   :  { %v3377_v61 = vrot.slane %v3240_v12, %v3376_v30 }
 0x2bb   :  { %v3379_v62 = vsel %vm3378_vm11, %v3377_v61, %v3372_v3 }
 0x2bc   :  { %v3386_v48 = vsel %vm3385_vm12, %v3384_v46, %v3379_v62 }
 0x2bd   :  { %v3300_v63 = vpop.permute.xlu0 %3299 }
 0x2be   :  { %v3487_v50 = vrot.slane %v3300_v63, %v3404_v24 }
 0x2c0   :  { %v3488_v17 = vsel %vm3406_vm15, %v3487_v50, %v3483_v13 }
 0x2c2   :  { %v3249_v38 = vpop.permute.xlu1 %3248 }
 0x2c3   :  { %v3398_v37 = vrot.slane %v3249_v38, %v3397_v33 }
 0x2c7   :  { %v3303_v8 = vpop.permute.xlu0 %3302 }
 0x2c8   :  { %v3492_v0 = vrot.slane %v3303_v8, %v3411_v11 }
 0x2ca   :  { %v3493_v21 = vsel %vm3413_vm0, %v3492_v0, %v3488_v17 }
 0x2cd   :  { %v3246_v44 = vpop.permute.xlu1 %3245 }
 0x2ce   :  { %v3391_v7 = vrot.slane %v3246_v44, %v3390_v43 }
 0x2d0   :  { %v3393_v10 = vsel %vm3392_vm13, %v3391_v7, %v3386_v48 }
 0x2d1   :  { %v3400_v14 = vsel %vm3399_vm14, %v3398_v37, %v3393_v10 }
 0x2d2   :  { %v3252_v47 = vpop.permute.xlu1 %3251 }
 0x2d3   :  { %v3405_v12 = vrot.slane %v3252_v47, %v3404_v24 }
 0x2d5   :  { %v3407_v18 = vsel %vm3406_vm15, %v3405_v12, %v3400_v14 }
 0x2d7   :  { %v3255_v42 = vpop.permute.xlu1 %3254 }
 0x2d8   :  { %v3412_v16 = vrot.slane %v3255_v42, %v3411_v11 }
 0x2da   :  { %v3414_v22 = vsel %vm3413_vm0, %v3412_v16, %v3407_v18 }
 0x2db   :  { %v3494_v25 = vcombine.low %v3414_v22, %v3493_v21 }
 0x2dd   :  { %v3501_v32 = vrot.slane %v3494_v25, %v3951_v54 }
 0x2df   :  { %v3508_v26 = vrot.slane %v3501_v32, %v3951_v54 }
 0x2e1   :  { %v3510_v27 = vadd.f32 %v3508_v26, %v487_v5 }
 0x2e3   :  { %3515 = vst.msk [vmem:[#allocation2] sm:$0x3] %vm4502_vm1, %v3510_v27 }
 0x2ea   :  { %v3519_v51 = vld [vmem:[#allocation2] sm:$0x3] }
 0x2eb   :  { %3520 = vst.msk [vmem:[#allocation9] sm:$0x3] %vm4502_vm1, %v3519_v51 }
 0x2ec   :  { %3525 = vsyncadd [#allocation5], 16  ;;  %s3786_s2 = smov [#allocation9]  }
 0x2ed   :  { %s3527_s23 = sshll.u32 %s3786_s2, 4  ;;  %s3528_s23 = int_to_ptr.vmem [resolvable:$true] %s3527_s23 }
 0x2ee   :  { %s3750_s24 = scalar_lea.vmem %s3528_s23, 16  ;;  %s3754_s25 = scalar_lea.vmem %s3528_s23, 32 }
 0x2ef   :  { %p3751_p10 = scmp.ne.s32.totalorder %s3528_s23, %s3750_s24  ;;  %p3755_p11 = scmp.lt.s32.totalorder %s3528_s23, %s3528_s23 }
 0x2f0   :  { %p3756_p12 = scmp.lt.s32.totalorder %s3754_s25, %s3750_s24 }
 0x2f2   :  { %p3757_p13 = por %p3756_p12, %p3755_p11 }
 0x2f4   :  { %p3758_p0 = pnand %p3757_p13, %p3751_p10 }
 0x2f6   :  { %3761 = shalt.err (!%p3758_p0)
}
 0x2f7   :  { %s3762_s28 = scalar_lea.hbm %s4624_s3, 16 }
 0x2f8   :  { %p3763_p1 = scmp.ne.s32.totalorder %s4624_s3, %s3762_s28  ;;  %p3766_p2 = scmp.lt.u32.totalorder %s3762_s28, %s4624_s3 }
 0x2fa   :  { %p3768_p3 = pnand %p3766_p2, %p3763_p1 }
 0x2fc   :  { %3771 = shalt.err (!%p3768_p3)
}
 0x2fd   :  { %3530 = dma.vmem_to_hbm [thread:$0]  %s3528_s23, 16, %s4624_s3, [#allocation5]  }
 0x2fe   :  { %3776 = dma.done.wait [#allocation5], 32  }
 0x2ff   :  { %3777 = vsyncadd [#allocation5], 4294967264 }
 0x300   :  { %3534 = vsyncpa [#allocation4], 1 }
 0x301   :  { %3535 = vsyncpa [#allocation7], 1 }
 0x302   :  { %3536 = vsyncpa [#allocation5], 1 }

</bundles_post_ra>
